<compile_context>
chip_gen: v6e
topology: v6e:2x2x1
jax: 0.10.0
libtpu: 0.0.40
codegen_flags: <defaults>
</compile_context>

<pallas_src>
import functools

import jax
import jax.numpy as jnp
from jax.experimental import pallas as pl
from jax.experimental.pallas import tpu as pltpu

LR_SLOPE = 0.1            # LeakyReLU negative slope
EPS = 1e-5                # InstanceNorm2d default eps
HALF = 64                 # feat lanes [0, HALF), gate lanes [HALF, 2*HALF)
PACK = 2 * HALF           # 128-lane packed MXU output (feat | gate)
MXU_DTYPE = jnp.bfloat16  # MXU operand dtype (f32 accumulation)
VMEM_LIMIT = 48 * 1024 * 1024   # fits every generation (v7x physical VMEM = 64 MiB)


def _rup8(c):
    return ((c + 7) // 8) * 8


# ------------------------------ fused kernel --------------------------------

def _down_fused_kernel(xpe_ref, xpo_ref, wd_ref, w1_ref, w2_ref, b_ref, o_ref,
                       pad1_ref, pad2_ref, g1_ref, *, Ho, Wo, c_out):
    """One batch element of Down(): down-conv -> (conv+IN+LReLU) x 2, all in VMEM.

    xpe/xpo: (H+2, Weff, c0) bf16  even/odd column phases of the padded input.
    wd:      (16, c0, 128) bf16    4x4 down-conv taps, feat|gate packed in 128 lanes.
    w1:      (9,  c0, 128) bf16    3x3 conv1 taps.
    w2:      (9,  cm, 128) bf16    3x3 conv2 taps.
    b:       (3, 128)      f32     packed biases for the 3 gated convs.
    o:       (M, c_out)    f32     final module output (M = Ho*Wo).
    pad1:    (Ho+2, Wo+2, c0) bf16 zero-bordered down-conv output (conv1 input).
    pad2:    (Ho+2, Wo+2, cm) bf16 zero-bordered conv1 output (conv2 input).
    g1:      (M, cm)       f32     conv1 pre-norm buffer (InstanceNorm needs full M).
    """
    c0 = pad1_ref.shape[-1]
    cm = pad2_ref.shape[-1]

    # Zero the padded scratches (only the borders actually need it; cheap).
    pad1_ref[...] = jnp.zeros(pad1_ref.shape, pad1_ref.dtype)
    pad2_ref[...] = jnp.zeros(pad2_ref.shape, pad2_ref.dtype)

    def gated(acc, bias_row):
        y = acc + bias_row                                   # (Wo, 128) f32
        return y[:, :HALF] * jax.nn.sigmoid(y[:, HALF:])     # (Wo, HALF) f32

    def inst_norm_lrelu(g):
        # InstanceNorm2d (affine=False, biased var) over the spatial axis,
        # then LeakyReLU(0.1).  Padded (all-zero) channels stay exactly zero.
        mean = jnp.mean(g, axis=0, keepdims=True)
        var = jnp.mean(jnp.square(g - mean), axis=0, keepdims=True)
        xn = (g - mean) * jax.lax.rsqrt(var + EPS)
        return jnp.where(xn >= 0, xn, LR_SLOPE * xn)

    # ---- stage 0: GatedConv2d(in, in, k=4, s=2, p=1) -> pad1 interior -------
    b0 = b_ref[0:1, :]

    def down_row(h, carry):
        acc = jnp.zeros((Wo, PACK), jnp.float32)
        for di in range(4):                                  # taps unrolled
            r = 2 * h + di                                   # padded input row
            for dj in range(4):
                src_ref = xpe_ref if dj % 2 == 0 else xpo_ref
                base = dj // 2
                xt = src_ref[r, base:base + Wo, :]           # (Wo, c0) bf16
                acc = acc + jnp.dot(xt, wd_ref[4 * di + dj],
                                    preferred_element_type=jnp.float32)
        g = gated(acc, b0)
        pad1_ref[h + 1, 1:1 + Wo, :] = g[:, :c0].astype(pad1_ref.dtype)
        return carry

    jax.lax.fori_loop(0, Ho, down_row, 0)

    # ---- stage 1: GatedConv2d(in, out, 3, p=1) -> IN -> LReLU -> pad2 -------
    b1 = b_ref[1:2, :]

    def conv1_row(h, carry):
        acc = jnp.zeros((Wo, PACK), jnp.float32)
        for di in range(3):
            for dj in range(3):
                xt = pad1_ref[h + di, dj:dj + Wo, :]         # (Wo, c0) bf16
                acc = acc + jnp.dot(xt, w1_ref[3 * di + dj],
                                    preferred_element_type=jnp.float32)
        g = gated(acc, b1)
        start = pl.multiple_of(h * Wo, Wo)
        g1_ref[pl.ds(start, Wo), :] = g[:, :cm]
        return carry

    jax.lax.fori_loop(0, Ho, conv1_row, 0)

    g1_ref[...] = inst_norm_lrelu(g1_ref[...])

    def scatter1(h, carry):
        start = pl.multiple_of(h * Wo, Wo)
        pad2_ref[h + 1, 1:1 + Wo, :] = (
            g1_ref[pl.ds(start, Wo), :].astype(pad2_ref.dtype))
        return carry

    jax.lax.fori_loop(0, Ho, scatter1, 0)

    # ---- stage 2: GatedConv2d(out, out, 3, p=1) -> IN -> LReLU -> output ----
    b2 = b_ref[2:3, :]

    def conv2_row(h, carry):
        acc = jnp.zeros((Wo, PACK), jnp.float32)
        for di in range(3):
            for dj in range(3):
                xt = pad2_ref[h + di, dj:dj + Wo, :]         # (Wo, cm) bf16
                acc = acc + jnp.dot(xt, w2_ref[3 * di + dj],
                                    preferred_element_type=jnp.float32)
        g = gated(acc, b2)
        start = pl.multiple_of(h * Wo, Wo)
        o_ref[pl.ds(start, Wo), :] = g[:, :c_out]
        return carry

    jax.lax.fori_loop(0, Ho, conv2_row, 0)

    o_ref[...] = inst_norm_lrelu(o_ref[...])


# ------------------------------- wrappers ------------------------------------

def _fuse_tap_weights(params, c_in_pad):
    """(wf, bf, wg, bg) -> per-tap weights (k*k, c_in_pad, 128) bf16 and
    packed bias (128,) f32.  feat -> lanes [0, c_out), gate -> [HALF, HALF+c_out)."""
    wf, bf, wg, bg = params                                  # wf/wg: (Cout, Cin, k, k)
    co, ci, kh, kw = wf.shape
    assert co <= HALF and ci <= c_in_pad
    wf_t = jnp.transpose(wf, (2, 3, 1, 0)).reshape(kh * kw, ci, co)
    wg_t = jnp.transpose(wg, (2, 3, 1, 0)).reshape(kh * kw, ci, co)
    w = jnp.zeros((kh * kw, c_in_pad, PACK), jnp.float32)
    w = w.at[:, :ci, :co].set(wf_t)
    w = w.at[:, :ci, HALF:HALF + co].set(wg_t)
    b = jnp.zeros((PACK,), jnp.float32)
    b = b.at[:co].set(bf).at[HALF:HALF + co].set(bg)
    return w.astype(MXU_DTYPE), b


def down_forward(x, params):
    """Down(in_ch, out_ch).forward.  x: (B, Cin, H, W) NCHW (PyTorch layout)."""
    B, c_in, H, W = x.shape
    assert H % 2 == 0 and W % 2 == 0, "stride-2 phase split assumes even H, W"
    Ho, Wo = H // 2, W // 2
    M = Ho * Wo
    c_out = params["conv1"][0].shape[0]
    c0 = _rup8(c_in)       # padded input / down-conv channel count
    cm = _rup8(c_out)      # padded mid channel count
    assert c0 <= HALF and cm <= HALF, "feat|gate 128-lane packing needs C <= 64"

    # One-time O(input) relayout (no k^2 im2col blow-up): NCHW -> NHWC, spatial
    # pad 1, channel pad to a multiple of 8, split into even/odd column phases
    # so the kernel's stride-2 taps become contiguous slices.
    y = jnp.transpose(x, (0, 2, 3, 1))
    y = jnp.pad(y, ((0, 0), (1, 1), (1, 1), (0, c0 - c_in))).astype(MXU_DTYPE)
    xpe = y[:, :, 0::2, :]                                   # (B, H+2, Weff, c0)
    xpo = y[:, :, 1::2, :]
    Weff = (W + 2) // 2

    wd, bd = _fuse_tap_weights(params["down"], c0)           # (16, c0, 128)
    w1, b1 = _fuse_tap_weights(params["conv1"], c0)          # (9,  c0, 128)
    w2, b2 = _fuse_tap_weights(params["conv2"], cm)          # (9,  cm, 128)
    bias = jnp.stack([bd, b1, b2], axis=0)                   # (3, 128) f32

    kernel = functools.partial(_down_fused_kernel, Ho=Ho, Wo=Wo, c_out=c_out)

    flops = 2 * B * M * PACK * (16 * c0 + 9 * c0 + 9 * cm)
    bytes_accessed = (xpe.size * 2 + xpo.size * 2
                      + (wd.size + w1.size + w2.size) * 2 + bias.size * 4
                      + B * M * c_out * 4)

    out = pl.pallas_call(
        kernel,
        out_shape=jax.ShapeDtypeStruct((B, M, c_out), jnp.float32),
        grid=(B,),
        in_specs=[
            pl.BlockSpec((None, H + 2, Weff, c0), lambda b: (b, 0, 0, 0)),
            pl.BlockSpec((None, H + 2, Weff, c0), lambda b: (b, 0, 0, 0)),
            pl.BlockSpec((16, c0, PACK), lambda b: (0, 0, 0)),   # resident weights
            pl.BlockSpec((9, c0, PACK), lambda b: (0, 0, 0)),
            pl.BlockSpec((9, cm, PACK), lambda b: (0, 0, 0)),
            pl.BlockSpec((3, PACK), lambda b: (0, 0)),           # resident bias
        ],
        out_specs=pl.BlockSpec((None, M, c_out), lambda b: (b, 0, 0)),
        scratch_shapes=[
            pltpu.VMEM((Ho + 2, Wo + 2, c0), MXU_DTYPE),  # padded down-conv output
            pltpu.VMEM((Ho + 2, Wo + 2, cm), MXU_DTYPE),  # padded conv1 output
            pltpu.VMEM((M, cm), jnp.float32),             # conv1 pre-norm buffer
        ],
        compiler_params=pltpu.CompilerParams(
            dimension_semantics=("parallel",),
            vmem_limit_bytes=VMEM_LIMIT),
        cost_estimate=pl.CostEstimate(
            flops=flops,
            transcendentals=3 * B * M * HALF,
            bytes_accessed=bytes_accessed),
    )(xpe, xpo, wd, w1, w2, bias)

    out = out.reshape(B, Ho, Wo, c_out)
    return jnp.transpose(out, (0, 3, 1, 2))                  # NHWC -> NCHW (once)


# --------------------------- parameter construction -------------------------

def init_gated_conv_params(key, c_in, c_out, k):
    """Deterministic init matching nn.Conv2d default (uniform +/- 1/sqrt(fan_in))."""
    k1, k2, k3, k4 = jax.random.split(key, 4)
    fan_in = c_in * k * k
    bound = 1.0 / (fan_in ** 0.5)
    wf = jax.random.uniform(k1, (c_out, c_in, k, k), jnp.float32, -bound, bound)
    bf = jax.random.uniform(k2, (c_out,), jnp.float32, -bound, bound)
    wg = jax.random.uniform(k3, (c_out, c_in, k, k), jnp.float32, -bound, bound)
    bg = jax.random.uniform(k4, (c_out,), jnp.float32, -bound, bound)
    return wf, bf, wg, bg


def init_down_params(key, in_channels, out_channels):
    kd, k1, k2 = jax.random.split(key, 3)
    return {
        "down":  init_gated_conv_params(kd, in_channels, in_channels, 4),
        "conv1": init_gated_conv_params(k1, in_channels, out_channels, 3),
        "conv2": init_gated_conv_params(k2, out_channels, out_channels, 3),
    }


# ----------------------------------- main ------------------------------------

if __name__ == "__main__":
    key = jax.random.PRNGKey(0)
    k_x, k_p = jax.random.split(key)

    B, in_ch, out_ch, H, W = 2, 4, 8, 16, 16
    x = jax.random.normal(k_x, (B, in_ch, H, W), jnp.float32)
    params = init_down_params(k_p, in_ch, out_ch)

    fwd = jax.jit(down_forward)
    y = fwd(x, params)
    jax.block_until_ready(y)

    assert y.shape == (B, out_ch, H // 2, W // 2), y.shape
    assert bool(jnp.all(jnp.isfinite(y)))
    print("KERNEL_OK")
</pallas_src>

<mosaic_0001>
module attributes {stable_mosaic.version = 11 : i64} {
  func.func @_down_fused_kernel(%arg0: i32, %arg1: memref<1x18x9x8xbf16, #tpu.memory_space<vmem>>, %arg2: memref<1x18x9x8xbf16, #tpu.memory_space<vmem>>, %arg3: memref<16x8x128xbf16, #tpu.memory_space<vmem>>, %arg4: memref<9x8x128xbf16, #tpu.memory_space<vmem>>, %arg5: memref<9x8x128xbf16, #tpu.memory_space<vmem>>, %arg6: memref<3x128xf32, #tpu.memory_space<vmem>>, %arg7: memref<1x64x8xf32, #tpu.memory_space<vmem>>, %arg8: memref<10x10x8xbf16, #tpu.memory_space<vmem>>, %arg9: memref<10x10x8xbf16, #tpu.memory_space<vmem>>, %arg10: memref<64x8xf32, #tpu.memory_space<vmem>>) attributes {dimension_semantics = [#tpu.dimension_semantics<parallel>], iteration_bounds = array<i64: 2>, scalar_prefetch = 0 : i64, scratch_operands = 3 : i64, tpu.core_type = #tpu.core_type<tc>, window_params = [{transform_indices = @transform_0, window_bounds = array<i64: 1, 18, 9, 8>}, {transform_indices = @transform_1, window_bounds = array<i64: 1, 18, 9, 8>}, {pipeline_mode = #tpu.pipeline_mode<synchronous>, transform_indices = @transform_2, window_bounds = array<i64: 16, 8, 128>}, {pipeline_mode = #tpu.pipeline_mode<synchronous>, transform_indices = @transform_3, window_bounds = array<i64: 9, 8, 128>}, {pipeline_mode = #tpu.pipeline_mode<synchronous>, transform_indices = @transform_4, window_bounds = array<i64: 9, 8, 128>}, {pipeline_mode = #tpu.pipeline_mode<synchronous>, transform_indices = @transform_5, window_bounds = array<i64: 3, 128>}, {transform_indices = @transform_6, window_bounds = array<i64: 1, 64, 8>}]} {
    %cst = arith.constant 0.000000e+00 : bf16
    %0 = vector.broadcast %cst : bf16 to vector<10x10x8xbf16>
    %c0 = arith.constant 0 : index
    %c0_0 = arith.constant 0 : index
    %c0_1 = arith.constant 0 : index
    %1 = vector.load %arg8[%c0, %c0_0, %c0_1] : memref<10x10x8xbf16, #tpu.memory_space<vmem>>, vector<10x10x8xbf16>
    tpu.vector_store %arg8[%c0, %c0_0, %c0_1], %0 {strides = array<i32>} : memref<10x10x8xbf16, #tpu.memory_space<vmem>>, vector<10x10x8xbf16>,
    %cst_2 = arith.constant 0.000000e+00 : bf16
    %2 = vector.broadcast %cst_2 : bf16 to vector<10x10x8xbf16>
    %c0_3 = arith.constant 0 : index
    %c0_4 = arith.constant 0 : index
    %c0_5 = arith.constant 0 : index
    %3 = vector.load %arg9[%c0_3, %c0_4, %c0_5] : memref<10x10x8xbf16, #tpu.memory_space<vmem>>, vector<10x10x8xbf16>
    tpu.vector_store %arg9[%c0_3, %c0_4, %c0_5], %2 {strides = array<i32>} : memref<10x10x8xbf16, #tpu.memory_space<vmem>>, vector<10x10x8xbf16>,
    %c0_6 = arith.constant 0 : index
    %c0_7 = arith.constant 0 : index
    %4 = vector.load %arg6[%c0_6, %c0_7] : memref<3x128xf32, #tpu.memory_space<vmem>>, vector<1x128xf32>
    %c0_i32 = arith.constant 0 : i32
    %c8_i32 = arith.constant 8 : i32
    %5 = arith.addi %c0_i32, %c8_i32 : i32
    %c1_i32 = arith.constant 1 : i32
    scf.for %arg11 = %c0_i32 to %5 step %c1_i32  : i32 {
      %cst_47 = arith.constant 0.000000e+00 : f32
      %64 = vector.broadcast %cst_47 : f32 to vector<8x128xf32>
      %c2_i32 = arith.constant 2 : i32
      %65 = arith.muli %c2_i32, %arg11 : i32
      %c0_i32_48 = arith.constant 0 : i32
      %66 = arith.addi %65, %c0_i32_48 : i32
      %c0_49 = arith.constant 0 : index
      %67 = arith.index_cast %66 : i32 to index
      %c0_50 = arith.constant 0 : index
      %c0_51 = arith.constant 0 : index
      %68 = vector.load %arg1[%c0_49, %67, %c0_50, %c0_51] : memref<1x18x9x8xbf16, #tpu.memory_space<vmem>>, vector<1x1x8x8xbf16>
      %69 = vector.shape_cast %68 : vector<1x1x8x8xbf16> to vector<8x8xbf16>
      %c0_52 = arith.constant 0 : index
      %c0_53 = arith.constant 0 : index
      %c0_54 = arith.constant 0 : index
      %70 = vector.load %arg3[%c0_52, %c0_53, %c0_54] : memref<16x8x128xbf16, #tpu.memory_space<vmem>>, vector<1x8x128xbf16>
      %71 = vector.shape_cast %70 : vector<1x8x128xbf16> to vector<8x128xbf16>
      %cst_55 = arith.constant dense<0.000000e+00> : vector<8x128xf32>
      %72 = tpu.matmul %69, %71, %cst_55 {dimension_numbers = #tpu.dot_dimension_numbers<[1], [0], [0], [1], [0, 0, 1, 1], [], []>} : vector<8x8xbf16>, vector<8x128xbf16>, vector<8x128xf32> -> vector<8x128xf32>
      %73 = arith.addf %64, %72 : vector<8x128xf32>
      %c0_56 = arith.constant 0 : index
      %74 = arith.index_cast %66 : i32 to index
      %c0_57 = arith.constant 0 : index
      %c0_58 = arith.constant 0 : index
      %75 = vector.load %arg2[%c0_56, %74, %c0_57, %c0_58] : memref<1x18x9x8xbf16, #tpu.memory_space<vmem>>, vector<1x1x8x8xbf16>
      %76 = vector.shape_cast %75 : vector<1x1x8x8xbf16> to vector<8x8xbf16>
      %c1_59 = arith.constant 1 : index
      %c0_60 = arith.constant 0 : index
      %c0_61 = arith.constant 0 : index
      %77 = vector.load %arg3[%c1_59, %c0_60, %c0_61] : memref<16x8x128xbf16, #tpu.memory_space<vmem>>, vector<1x8x128xbf16>
      %78 = vector.shape_cast %77 : vector<1x8x128xbf16> to vector<8x128xbf16>
      %cst_62 = arith.constant dense<0.000000e+00> : vector<8x128xf32>
      %79 = tpu.matmul %76, %78, %cst_62 {dimension_numbers = #tpu.dot_dimension_numbers<[1], [0], [0], [1], [0, 0, 1, 1], [], []>} : vector<8x8xbf16>, vector<8x128xbf16>, vector<8x128xf32> -> vector<8x128xf32>
      %80 = arith.addf %73, %79 : vector<8x128xf32>
      %c0_63 = arith.constant 0 : index
      %81 = arith.index_cast %66 : i32 to index
      %c1_64 = arith.constant 1 : index
      %c0_65 = arith.constant 0 : index
      %82 = vector.load %arg1[%c0_63, %81, %c1_64, %c0_65] : memref<1x18x9x8xbf16, #tpu.memory_space<vmem>>, vector<1x1x8x8xbf16>
      %83 = vector.shape_cast %82 : vector<1x1x8x8xbf16> to vector<8x8xbf16>
      %c2_66 = arith.constant 2 : index
      %c0_67 = arith.constant 0 : index
      %c0_68 = arith.constant 0 : index
      %84 = vector.load %arg3[%c2_66, %c0_67, %c0_68] : memref<16x8x128xbf16, #tpu.memory_space<vmem>>, vector<1x8x128xbf16>
      %85 = vector.shape_cast %84 : vector<1x8x128xbf16> to vector<8x128xbf16>
      %cst_69 = arith.constant dense<0.000000e+00> : vector<8x128xf32>
      %86 = tpu.matmul %83, %85, %cst_69 {dimension_numbers = #tpu.dot_dimension_numbers<[1], [0], [0], [1], [0, 0, 1, 1], [], []>} : vector<8x8xbf16>, vector<8x128xbf16>, vector<8x128xf32> -> vector<8x128xf32>
      %87 = arith.addf %80, %86 : vector<8x128xf32>
      %c0_70 = arith.constant 0 : index
      %88 = arith.index_cast %66 : i32 to index
      %c1_71 = arith.constant 1 : index
      %c0_72 = arith.constant 0 : index
      %89 = vector.load %arg2[%c0_70, %88, %c1_71, %c0_72] : memref<1x18x9x8xbf16, #tpu.memory_space<vmem>>, vector<1x1x8x8xbf16>
      %90 = vector.shape_cast %89 : vector<1x1x8x8xbf16> to vector<8x8xbf16>
      %c3 = arith.constant 3 : index
      %c0_73 = arith.constant 0 : index
      %c0_74 = arith.constant 0 : index
      %91 = vector.load %arg3[%c3, %c0_73, %c0_74] : memref<16x8x128xbf16, #tpu.memory_space<vmem>>, vector<1x8x128xbf16>
      %92 = vector.shape_cast %91 : vector<1x8x128xbf16> to vector<8x128xbf16>
      %cst_75 = arith.constant dense<0.000000e+00> : vector<8x128xf32>
      %93 = tpu.matmul %90, %92, %cst_75 {dimension_numbers = #tpu.dot_dimension_numbers<[1], [0], [0], [1], [0, 0, 1, 1], [], []>} : vector<8x8xbf16>, vector<8x128xbf16>, vector<8x128xf32> -> vector<8x128xf32>
      %94 = arith.addf %87, %93 : vector<8x128xf32>
      %c2_i32_76 = arith.constant 2 : i32
      %95 = arith.muli %c2_i32_76, %arg11 : i32
      %c1_i32_77 = arith.constant 1 : i32
      %96 = arith.addi %95, %c1_i32_77 : i32
      %c0_78 = arith.constant 0 : index
      %97 = arith.index_cast %96 : i32 to index
      %c0_79 = arith.constant 0 : index
      %c0_80 = arith.constant 0 : index
      %98 = vector.load %arg1[%c0_78, %97, %c0_79, %c0_80] : memref<1x18x9x8xbf16, #tpu.memory_space<vmem>>, vector<1x1x8x8xbf16>
      %99 = vector.shape_cast %98 : vector<1x1x8x8xbf16> to vector<8x8xbf16>
      %c4 = arith.constant 4 : index
      %c0_81 = arith.constant 0 : index
      %c0_82 = arith.constant 0 : index
      %100 = vector.load %arg3[%c4, %c0_81, %c0_82] : memref<16x8x128xbf16, #tpu.memory_space<vmem>>, vector<1x8x128xbf16>
      %101 = vector.shape_cast %100 : vector<1x8x128xbf16> to vector<8x128xbf16>
      %cst_83 = arith.constant dense<0.000000e+00> : vector<8x128xf32>
      %102 = tpu.matmul %99, %101, %cst_83 {dimension_numbers = #tpu.dot_dimension_numbers<[1], [0], [0], [1], [0, 0, 1, 1], [], []>} : vector<8x8xbf16>, vector<8x128xbf16>, vector<8x128xf32> -> vector<8x128xf32>
      %103 = arith.addf %94, %102 : vector<8x128xf32>
      %c0_84 = arith.constant 0 : index
      %104 = arith.index_cast %96 : i32 to index
      %c0_85 = arith.constant 0 : index
      %c0_86 = arith.constant 0 : index
      %105 = vector.load %arg2[%c0_84, %104, %c0_85, %c0_86] : memref<1x18x9x8xbf16, #tpu.memory_space<vmem>>, vector<1x1x8x8xbf16>
      %106 = vector.shape_cast %105 : vector<1x1x8x8xbf16> to vector<8x8xbf16>
      %c5 = arith.constant 5 : index
      %c0_87 = arith.constant 0 : index
      %c0_88 = arith.constant 0 : index
      %107 = vector.load %arg3[%c5, %c0_87, %c0_88] : memref<16x8x128xbf16, #tpu.memory_space<vmem>>, vector<1x8x128xbf16>
      %108 = vector.shape_cast %107 : vector<1x8x128xbf16> to vector<8x128xbf16>
      %cst_89 = arith.constant dense<0.000000e+00> : vector<8x128xf32>
      %109 = tpu.matmul %106, %108, %cst_89 {dimension_numbers = #tpu.dot_dimension_numbers<[1], [0], [0], [1], [0, 0, 1, 1], [], []>} : vector<8x8xbf16>, vector<8x128xbf16>, vector<8x128xf32> -> vector<8x128xf32>
      %110 = arith.addf %103, %109 : vector<8x128xf32>
      %c0_90 = arith.constant 0 : index
      %111 = arith.index_cast %96 : i32 to index
      %c1_91 = arith.constant 1 : index
      %c0_92 = arith.constant 0 : index
      %112 = vector.load %arg1[%c0_90, %111, %c1_91, %c0_92] : memref<1x18x9x8xbf16, #tpu.memory_space<vmem>>, vector<1x1x8x8xbf16>
      %113 = vector.shape_cast %112 : vector<1x1x8x8xbf16> to vector<8x8xbf16>
      %c6 = arith.constant 6 : index
      %c0_93 = arith.constant 0 : index
      %c0_94 = arith.constant 0 : index
      %114 = vector.load %arg3[%c6, %c0_93, %c0_94] : memref<16x8x128xbf16, #tpu.memory_space<vmem>>, vector<1x8x128xbf16>
      %115 = vector.shape_cast %114 : vector<1x8x128xbf16> to vector<8x128xbf16>
      %cst_95 = arith.constant dense<0.000000e+00> : vector<8x128xf32>
      %116 = tpu.matmul %113, %115, %cst_95 {dimension_numbers = #tpu.dot_dimension_numbers<[1], [0], [0], [1], [0, 0, 1, 1], [], []>} : vector<8x8xbf16>, vector<8x128xbf16>, vector<8x128xf32> -> vector<8x128xf32>
      %117 = arith.addf %110, %116 : vector<8x128xf32>
      %c0_96 = arith.constant 0 : index
      %118 = arith.index_cast %96 : i32 to index
      %c1_97 = arith.constant 1 : index
      %c0_98 = arith.constant 0 : index
      %119 = vector.load %arg2[%c0_96, %118, %c1_97, %c0_98] : memref<1x18x9x8xbf16, #tpu.memory_space<vmem>>, vector<1x1x8x8xbf16>
      %120 = vector.shape_cast %119 : vector<1x1x8x8xbf16> to vector<8x8xbf16>
      %c7 = arith.constant 7 : index
      %c0_99 = arith.constant 0 : index
      %c0_100 = arith.constant 0 : index
      %121 = vector.load %arg3[%c7, %c0_99, %c0_100] : memref<16x8x128xbf16, #tpu.memory_space<vmem>>, vector<1x8x128xbf16>
      %122 = vector.shape_cast %121 : vector<1x8x128xbf16> to vector<8x128xbf16>
      %cst_101 = arith.constant dense<0.000000e+00> : vector<8x128xf32>
      %123 = tpu.matmul %120, %122, %cst_101 {dimension_numbers = #tpu.dot_dimension_numbers<[1], [0], [0], [1], [0, 0, 1, 1], [], []>} : vector<8x8xbf16>, vector<8x128xbf16>, vector<8x128xf32> -> vector<8x128xf32>
      %124 = arith.addf %117, %123 : vector<8x128xf32>
      %c2_i32_102 = arith.constant 2 : i32
      %125 = arith.muli %c2_i32_102, %arg11 : i32
      %c2_i32_103 = arith.constant 2 : i32
      %126 = arith.addi %125, %c2_i32_103 : i32
      %c0_104 = arith.constant 0 : index
      %127 = arith.index_cast %126 : i32 to index
      %c0_105 = arith.constant 0 : index
      %c0_106 = arith.constant 0 : index
      %128 = vector.load %arg1[%c0_104, %127, %c0_105, %c0_106] : memref<1x18x9x8xbf16, #tpu.memory_space<vmem>>, vector<1x1x8x8xbf16>
      %129 = vector.shape_cast %128 : vector<1x1x8x8xbf16> to vector<8x8xbf16>
      %c8 = arith.constant 8 : index
      %c0_107 = arith.constant 0 : index
      %c0_108 = arith.constant 0 : index
      %130 = vector.load %arg3[%c8, %c0_107, %c0_108] : memref<16x8x128xbf16, #tpu.memory_space<vmem>>, vector<1x8x128xbf16>
      %131 = vector.shape_cast %130 : vector<1x8x128xbf16> to vector<8x128xbf16>
      %cst_109 = arith.constant dense<0.000000e+00> : vector<8x128xf32>
      %132 = tpu.matmul %129, %131, %cst_109 {dimension_numbers = #tpu.dot_dimension_numbers<[1], [0], [0], [1], [0, 0, 1, 1], [], []>} : vector<8x8xbf16>, vector<8x128xbf16>, vector<8x128xf32> -> vector<8x128xf32>
      %133 = arith.addf %124, %132 : vector<8x128xf32>
      %c0_110 = arith.constant 0 : index
      %134 = arith.index_cast %126 : i32 to index
      %c0_111 = arith.constant 0 : index
      %c0_112 = arith.constant 0 : index
      %135 = vector.load %arg2[%c0_110, %134, %c0_111, %c0_112] : memref<1x18x9x8xbf16, #tpu.memory_space<vmem>>, vector<1x1x8x8xbf16>
      %136 = vector.shape_cast %135 : vector<1x1x8x8xbf16> to vector<8x8xbf16>
      %c9 = arith.constant 9 : index
      %c0_113 = arith.constant 0 : index
      %c0_114 = arith.constant 0 : index
      %137 = vector.load %arg3[%c9, %c0_113, %c0_114] : memref<16x8x128xbf16, #tpu.memory_space<vmem>>, vector<1x8x128xbf16>
      %138 = vector.shape_cast %137 : vector<1x8x128xbf16> to vector<8x128xbf16>
      %cst_115 = arith.constant dense<0.000000e+00> : vector<8x128xf32>
      %139 = tpu.matmul %136, %138, %cst_115 {dimension_numbers = #tpu.dot_dimension_numbers<[1], [0], [0], [1], [0, 0, 1, 1], [], []>} : vector<8x8xbf16>, vector<8x128xbf16>, vector<8x128xf32> -> vector<8x128xf32>
      %140 = arith.addf %133, %139 : vector<8x128xf32>
      %c0_116 = arith.constant 0 : index
      %141 = arith.index_cast %126 : i32 to index
      %c1_117 = arith.constant 1 : index
      %c0_118 = arith.constant 0 : index
      %142 = vector.load %arg1[%c0_116, %141, %c1_117, %c0_118] : memref<1x18x9x8xbf16, #tpu.memory_space<vmem>>, vector<1x1x8x8xbf16>
      %143 = vector.shape_cast %142 : vector<1x1x8x8xbf16> to vector<8x8xbf16>
      %c10 = arith.constant 10 : index
      %c0_119 = arith.constant 0 : index
      %c0_120 = arith.constant 0 : index
      %144 = vector.load %arg3[%c10, %c0_119, %c0_120] : memref<16x8x128xbf16, #tpu.memory_space<vmem>>, vector<1x8x128xbf16>
      %145 = vector.shape_cast %144 : vector<1x8x128xbf16> to vector<8x128xbf16>
      %cst_121 = arith.constant dense<0.000000e+00> : vector<8x128xf32>
      %146 = tpu.matmul %143, %145, %cst_121 {dimension_numbers = #tpu.dot_dimension_numbers<[1], [0], [0], [1], [0, 0, 1, 1], [], []>} : vector<8x8xbf16>, vector<8x128xbf16>, vector<8x128xf32> -> vector<8x128xf32>
      %147 = arith.addf %140, %146 : vector<8x128xf32>
      %c0_122 = arith.constant 0 : index
      %148 = arith.index_cast %126 : i32 to index
      %c1_123 = arith.constant 1 : index
      %c0_124 = arith.constant 0 : index
      %149 = vector.load %arg2[%c0_122, %148, %c1_123, %c0_124] : memref<1x18x9x8xbf16, #tpu.memory_space<vmem>>, vector<1x1x8x8xbf16>
      %150 = vector.shape_cast %149 : vector<1x1x8x8xbf16> to vector<8x8xbf16>
      %c11 = arith.constant 11 : index
      %c0_125 = arith.constant 0 : index
      %c0_126 = arith.constant 0 : index
      %151 = vector.load %arg3[%c11, %c0_125, %c0_126] : memref<16x8x128xbf16, #tpu.memory_space<vmem>>, vector<1x8x128xbf16>
      %152 = vector.shape_cast %151 : vector<1x8x128xbf16> to vector<8x128xbf16>
      %cst_127 = arith.constant dense<0.000000e+00> : vector<8x128xf32>
      %153 = tpu.matmul %150, %152, %cst_127 {dimension_numbers = #tpu.dot_dimension_numbers<[1], [0], [0], [1], [0, 0, 1, 1], [], []>} : vector<8x8xbf16>, vector<8x128xbf16>, vector<8x128xf32> -> vector<8x128xf32>
      %154 = arith.addf %147, %153 : vector<8x128xf32>
      %c2_i32_128 = arith.constant 2 : i32
      %155 = arith.muli %c2_i32_128, %arg11 : i32
      %c3_i32 = arith.constant 3 : i32
      %156 = arith.addi %155, %c3_i32 : i32
      %c0_129 = arith.constant 0 : index
      %157 = arith.index_cast %156 : i32 to index
      %c0_130 = arith.constant 0 : index
      %c0_131 = arith.constant 0 : index
      %158 = vector.load %arg1[%c0_129, %157, %c0_130, %c0_131] : memref<1x18x9x8xbf16, #tpu.memory_space<vmem>>, vector<1x1x8x8xbf16>
      %159 = vector.shape_cast %158 : vector<1x1x8x8xbf16> to vector<8x8xbf16>
      %c12 = arith.constant 12 : index
      %c0_132 = arith.constant 0 : index
      %c0_133 = arith.constant 0 : index
      %160 = vector.load %arg3[%c12, %c0_132, %c0_133] : memref<16x8x128xbf16, #tpu.memory_space<vmem>>, vector<1x8x128xbf16>
      %161 = vector.shape_cast %160 : vector<1x8x128xbf16> to vector<8x128xbf16>
      %cst_134 = arith.constant dense<0.000000e+00> : vector<8x128xf32>
      %162 = tpu.matmul %159, %161, %cst_134 {dimension_numbers = #tpu.dot_dimension_numbers<[1], [0], [0], [1], [0, 0, 1, 1], [], []>} : vector<8x8xbf16>, vector<8x128xbf16>, vector<8x128xf32> -> vector<8x128xf32>
      %163 = arith.addf %154, %162 : vector<8x128xf32>
      %c0_135 = arith.constant 0 : index
      %164 = arith.index_cast %156 : i32 to index
      %c0_136 = arith.constant 0 : index
      %c0_137 = arith.constant 0 : index
      %165 = vector.load %arg2[%c0_135, %164, %c0_136, %c0_137] : memref<1x18x9x8xbf16, #tpu.memory_space<vmem>>, vector<1x1x8x8xbf16>
      %166 = vector.shape_cast %165 : vector<1x1x8x8xbf16> to vector<8x8xbf16>
      %c13 = arith.constant 13 : index
      %c0_138 = arith.constant 0 : index
      %c0_139 = arith.constant 0 : index
      %167 = vector.load %arg3[%c13, %c0_138, %c0_139] : memref<16x8x128xbf16, #tpu.memory_space<vmem>>, vector<1x8x128xbf16>
      %168 = vector.shape_cast %167 : vector<1x8x128xbf16> to vector<8x128xbf16>
      %cst_140 = arith.constant dense<0.000000e+00> : vector<8x128xf32>
      %169 = tpu.matmul %166, %168, %cst_140 {dimension_numbers = #tpu.dot_dimension_numbers<[1], [0], [0], [1], [0, 0, 1, 1], [], []>} : vector<8x8xbf16>, vector<8x128xbf16>, vector<8x128xf32> -> vector<8x128xf32>
      %170 = arith.addf %163, %169 : vector<8x128xf32>
      %c0_141 = arith.constant 0 : index
      %171 = arith.index_cast %156 : i32 to index
      %c1_142 = arith.constant 1 : index
      %c0_143 = arith.constant 0 : index
      %172 = vector.load %arg1[%c0_141, %171, %c1_142, %c0_143] : memref<1x18x9x8xbf16, #tpu.memory_space<vmem>>, vector<1x1x8x8xbf16>
      %173 = vector.shape_cast %172 : vector<1x1x8x8xbf16> to vector<8x8xbf16>
      %c14 = arith.constant 14 : index
      %c0_144 = arith.constant 0 : index
      %c0_145 = arith.constant 0 : index
      %174 = vector.load %arg3[%c14, %c0_144, %c0_145] : memref<16x8x128xbf16, #tpu.memory_space<vmem>>, vector<1x8x128xbf16>
      %175 = vector.shape_cast %174 : vector<1x8x128xbf16> to vector<8x128xbf16>
      %cst_146 = arith.constant dense<0.000000e+00> : vector<8x128xf32>
      %176 = tpu.matmul %173, %175, %cst_146 {dimension_numbers = #tpu.dot_dimension_numbers<[1], [0], [0], [1], [0, 0, 1, 1], [], []>} : vector<8x8xbf16>, vector<8x128xbf16>, vector<8x128xf32> -> vector<8x128xf32>
      %177 = arith.addf %170, %176 : vector<8x128xf32>
      %c0_147 = arith.constant 0 : index
      %178 = arith.index_cast %156 : i32 to index
      %c1_148 = arith.constant 1 : index
      %c0_149 = arith.constant 0 : index
      %179 = vector.load %arg2[%c0_147, %178, %c1_148, %c0_149] : memref<1x18x9x8xbf16, #tpu.memory_space<vmem>>, vector<1x1x8x8xbf16>
      %180 = vector.shape_cast %179 : vector<1x1x8x8xbf16> to vector<8x8xbf16>
      %c15 = arith.constant 15 : index
      %c0_150 = arith.constant 0 : index
      %c0_151 = arith.constant 0 : index
      %181 = vector.load %arg3[%c15, %c0_150, %c0_151] : memref<16x8x128xbf16, #tpu.memory_space<vmem>>, vector<1x8x128xbf16>
      %182 = vector.shape_cast %181 : vector<1x8x128xbf16> to vector<8x128xbf16>
      %cst_152 = arith.constant dense<0.000000e+00> : vector<8x128xf32>
      %183 = tpu.matmul %180, %182, %cst_152 {dimension_numbers = #tpu.dot_dimension_numbers<[1], [0], [0], [1], [0, 0, 1, 1], [], []>} : vector<8x8xbf16>, vector<8x128xbf16>, vector<8x128xf32> -> vector<8x128xf32>
      %184 = arith.addf %177, %183 : vector<8x128xf32>
      %185 = vector.broadcast %4 : vector<1x128xf32> to vector<8x128xf32>
      %186 = arith.addf %184, %185 : vector<8x128xf32>
      %187 = vector.extract_strided_slice %186 {offsets = [0, 0], sizes = [8, 64], strides = [1, 1]} : vector<8x128xf32> to vector<8x64xf32>
      %188 = vector.extract_strided_slice %186 {offsets = [0, 64], sizes = [8, 64], strides = [1, 1]} : vector<8x128xf32> to vector<8x64xf32>
      %189 = arith.negf %188 : vector<8x64xf32>
      %190 = math.exp %189 : vector<8x64xf32>
      %cst_153 = arith.constant 1.000000e+00 : f32
      %191 = vector.broadcast %cst_153 : f32 to vector<8x64xf32>
      %192 = arith.addf %191, %190 : vector<8x64xf32>
      %193 = arith.divf %191, %192 : vector<8x64xf32>
      %194 = arith.mulf %187, %193 : vector<8x64xf32>
      %195 = vector.extract_strided_slice %194 {offsets = [0, 0], sizes = [8, 8], strides = [1, 1]} : vector<8x64xf32> to vector<8x8xf32>
      %196 = arith.truncf %195 : vector<8x8xf32> to vector<8x8xbf16>
      %c1_i32_154 = arith.constant 1 : i32
      %197 = arith.addi %arg11, %c1_i32_154 : i32
      %198 = arith.index_cast %197 : i32 to index
      %c1_155 = arith.constant 1 : index
      %c0_156 = arith.constant 0 : index
      %199 = vector.load %arg8[%198, %c1_155, %c0_156] : memref<10x10x8xbf16, #tpu.memory_space<vmem>>, vector<1x8x8xbf16>
      %200 = vector.shape_cast %199 : vector<1x8x8xbf16> to vector<8x8xbf16>
      %201 = vector.shape_cast %196 : vector<8x8xbf16> to vector<1x8x8xbf16>
      tpu.vector_store %arg8[%198, %c1_155, %c0_156], %201 {strides = array<i32>} : memref<10x10x8xbf16, #tpu.memory_space<vmem>>, vector<1x8x8xbf16>,
    }
    %c8_i32_8 = arith.constant 8 : i32
    %c1 = arith.constant 1 : index
    %c0_9 = arith.constant 0 : index
    %6 = vector.load %arg6[%c1, %c0_9] : memref<3x128xf32, #tpu.memory_space<vmem>>, vector<1x128xf32>
    %c0_i32_10 = arith.constant 0 : i32
    %c8_i32_11 = arith.constant 8 : i32
    %7 = arith.addi %c0_i32_10, %c8_i32_11 : i32
    %c1_i32_12 = arith.constant 1 : i32
    scf.for %arg11 = %c0_i32_10 to %7 step %c1_i32_12  : i32 {
      %cst_47 = arith.constant 0.000000e+00 : f32
      %64 = vector.broadcast %cst_47 : f32 to vector<8x128xf32>
      %c0_i32_48 = arith.constant 0 : i32
      %65 = arith.addi %arg11, %c0_i32_48 : i32
      %66 = arith.index_cast %65 : i32 to index
      %c0_49 = arith.constant 0 : index
      %c0_50 = arith.constant 0 : index
      %67 = vector.load %arg8[%66, %c0_49, %c0_50] : memref<10x10x8xbf16, #tpu.memory_space<vmem>>, vector<1x8x8xbf16>
      %68 = vector.shape_cast %67 : vector<1x8x8xbf16> to vector<8x8xbf16>
      %c0_51 = arith.constant 0 : index
      %c0_52 = arith.constant 0 : index
      %c0_53 = arith.constant 0 : index
      %69 = vector.load %arg4[%c0_51, %c0_52, %c0_53] : memref<9x8x128xbf16, #tpu.memory_space<vmem>>, vector<1x8x128xbf16>
      %70 = vector.shape_cast %69 : vector<1x8x128xbf16> to vector<8x128xbf16>
      %cst_54 = arith.constant dense<0.000000e+00> : vector<8x128xf32>
      %71 = tpu.matmul %68, %70, %cst_54 {dimension_numbers = #tpu.dot_dimension_numbers<[1], [0], [0], [1], [0, 0, 1, 1], [], []>} : vector<8x8xbf16>, vector<8x128xbf16>, vector<8x128xf32> -> vector<8x128xf32>
      %72 = arith.addf %64, %71 : vector<8x128xf32>
      %c0_i32_55 = arith.constant 0 : i32
      %73 = arith.addi %arg11, %c0_i32_55 : i32
      %74 = arith.index_cast %73 : i32 to index
      %c1_56 = arith.constant 1 : index
      %c0_57 = arith.constant 0 : index
      %75 = vector.load %arg8[%74, %c1_56, %c0_57] : memref<10x10x8xbf16, #tpu.memory_space<vmem>>, vector<1x8x8xbf16>
      %76 = vector.shape_cast %75 : vector<1x8x8xbf16> to vector<8x8xbf16>
      %c1_58 = arith.constant 1 : index
      %c0_59 = arith.constant 0 : index
      %c0_60 = arith.constant 0 : index
      %77 = vector.load %arg4[%c1_58, %c0_59, %c0_60] : memref<9x8x128xbf16, #tpu.memory_space<vmem>>, vector<1x8x128xbf16>
      %78 = vector.shape_cast %77 : vector<1x8x128xbf16> to vector<8x128xbf16>
      %cst_61 = arith.constant dense<0.000000e+00> : vector<8x128xf32>
      %79 = tpu.matmul %76, %78, %cst_61 {dimension_numbers = #tpu.dot_dimension_numbers<[1], [0], [0], [1], [0, 0, 1, 1], [], []>} : vector<8x8xbf16>, vector<8x128xbf16>, vector<8x128xf32> -> vector<8x128xf32>
      %80 = arith.addf %72, %79 : vector<8x128xf32>
      %c0_i32_62 = arith.constant 0 : i32
      %81 = arith.addi %arg11, %c0_i32_62 : i32
      %82 = arith.index_cast %81 : i32 to index
      %c2_63 = arith.constant 2 : index
      %c0_64 = arith.constant 0 : index
      %83 = vector.load %arg8[%82, %c2_63, %c0_64] : memref<10x10x8xbf16, #tpu.memory_space<vmem>>, vector<1x8x8xbf16>
      %84 = vector.shape_cast %83 : vector<1x8x8xbf16> to vector<8x8xbf16>
      %c2_65 = arith.constant 2 : index
      %c0_66 = arith.constant 0 : index
      %c0_67 = arith.constant 0 : index
      %85 = vector.load %arg4[%c2_65, %c0_66, %c0_67] : memref<9x8x128xbf16, #tpu.memory_space<vmem>>, vector<1x8x128xbf16>
      %86 = vector.shape_cast %85 : vector<1x8x128xbf16> to vector<8x128xbf16>
      %cst_68 = arith.constant dense<0.000000e+00> : vector<8x128xf32>
      %87 = tpu.matmul %84, %86, %cst_68 {dimension_numbers = #tpu.dot_dimension_numbers<[1], [0], [0], [1], [0, 0, 1, 1], [], []>} : vector<8x8xbf16>, vector<8x128xbf16>, vector<8x128xf32> -> vector<8x128xf32>
      %88 = arith.addf %80, %87 : vector<8x128xf32>
      %c1_i32_69 = arith.constant 1 : i32
      %89 = arith.addi %arg11, %c1_i32_69 : i32
      %90 = arith.index_cast %89 : i32 to index
      %c0_70 = arith.constant 0 : index
      %c0_71 = arith.constant 0 : index
      %91 = vector.load %arg8[%90, %c0_70, %c0_71] : memref<10x10x8xbf16, #tpu.memory_space<vmem>>, vector<1x8x8xbf16>
      %92 = vector.shape_cast %91 : vector<1x8x8xbf16> to vector<8x8xbf16>
      %c3 = arith.constant 3 : index
      %c0_72 = arith.constant 0 : index
      %c0_73 = arith.constant 0 : index
      %93 = vector.load %arg4[%c3, %c0_72, %c0_73] : memref<9x8x128xbf16, #tpu.memory_space<vmem>>, vector<1x8x128xbf16>
      %94 = vector.shape_cast %93 : vector<1x8x128xbf16> to vector<8x128xbf16>
      %cst_74 = arith.constant dense<0.000000e+00> : vector<8x128xf32>
      %95 = tpu.matmul %92, %94, %cst_74 {dimension_numbers = #tpu.dot_dimension_numbers<[1], [0], [0], [1], [0, 0, 1, 1], [], []>} : vector<8x8xbf16>, vector<8x128xbf16>, vector<8x128xf32> -> vector<8x128xf32>
      %96 = arith.addf %88, %95 : vector<8x128xf32>
      %c1_i32_75 = arith.constant 1 : i32
      %97 = arith.addi %arg11, %c1_i32_75 : i32
      %98 = arith.index_cast %97 : i32 to index
      %c1_76 = arith.constant 1 : index
      %c0_77 = arith.constant 0 : index
      %99 = vector.load %arg8[%98, %c1_76, %c0_77] : memref<10x10x8xbf16, #tpu.memory_space<vmem>>, vector<1x8x8xbf16>
      %100 = vector.shape_cast %99 : vector<1x8x8xbf16> to vector<8x8xbf16>
      %c4 = arith.constant 4 : index
      %c0_78 = arith.constant 0 : index
      %c0_79 = arith.constant 0 : index
      %101 = vector.load %arg4[%c4, %c0_78, %c0_79] : memref<9x8x128xbf16, #tpu.memory_space<vmem>>, vector<1x8x128xbf16>
      %102 = vector.shape_cast %101 : vector<1x8x128xbf16> to vector<8x128xbf16>
      %cst_80 = arith.constant dense<0.000000e+00> : vector<8x128xf32>
      %103 = tpu.matmul %100, %102, %cst_80 {dimension_numbers = #tpu.dot_dimension_numbers<[1], [0], [0], [1], [0, 0, 1, 1], [], []>} : vector<8x8xbf16>, vector<8x128xbf16>, vector<8x128xf32> -> vector<8x128xf32>
      %104 = arith.addf %96, %103 : vector<8x128xf32>
      %c1_i32_81 = arith.constant 1 : i32
      %105 = arith.addi %arg11, %c1_i32_81 : i32
      %106 = arith.index_cast %105 : i32 to index
      %c2_82 = arith.constant 2 : index
      %c0_83 = arith.constant 0 : index
      %107 = vector.load %arg8[%106, %c2_82, %c0_83] : memref<10x10x8xbf16, #tpu.memory_space<vmem>>, vector<1x8x8xbf16>
      %108 = vector.shape_cast %107 : vector<1x8x8xbf16> to vector<8x8xbf16>
      %c5 = arith.constant 5 : index
      %c0_84 = arith.constant 0 : index
      %c0_85 = arith.constant 0 : index
      %109 = vector.load %arg4[%c5, %c0_84, %c0_85] : memref<9x8x128xbf16, #tpu.memory_space<vmem>>, vector<1x8x128xbf16>
      %110 = vector.shape_cast %109 : vector<1x8x128xbf16> to vector<8x128xbf16>
      %cst_86 = arith.constant dense<0.000000e+00> : vector<8x128xf32>
      %111 = tpu.matmul %108, %110, %cst_86 {dimension_numbers = #tpu.dot_dimension_numbers<[1], [0], [0], [1], [0, 0, 1, 1], [], []>} : vector<8x8xbf16>, vector<8x128xbf16>, vector<8x128xf32> -> vector<8x128xf32>
      %112 = arith.addf %104, %111 : vector<8x128xf32>
      %c2_i32 = arith.constant 2 : i32
      %113 = arith.addi %arg11, %c2_i32 : i32
      %114 = arith.index_cast %113 : i32 to index
      %c0_87 = arith.constant 0 : index
      %c0_88 = arith.constant 0 : index
      %115 = vector.load %arg8[%114, %c0_87, %c0_88] : memref<10x10x8xbf16, #tpu.memory_space<vmem>>, vector<1x8x8xbf16>
      %116 = vector.shape_cast %115 : vector<1x8x8xbf16> to vector<8x8xbf16>
      %c6 = arith.constant 6 : index
      %c0_89 = arith.constant 0 : index
      %c0_90 = arith.constant 0 : index
      %117 = vector.load %arg4[%c6, %c0_89, %c0_90] : memref<9x8x128xbf16, #tpu.memory_space<vmem>>, vector<1x8x128xbf16>
      %118 = vector.shape_cast %117 : vector<1x8x128xbf16> to vector<8x128xbf16>
      %cst_91 = arith.constant dense<0.000000e+00> : vector<8x128xf32>
      %119 = tpu.matmul %116, %118, %cst_91 {dimension_numbers = #tpu.dot_dimension_numbers<[1], [0], [0], [1], [0, 0, 1, 1], [], []>} : vector<8x8xbf16>, vector<8x128xbf16>, vector<8x128xf32> -> vector<8x128xf32>
      %120 = arith.addf %112, %119 : vector<8x128xf32>
      %c2_i32_92 = arith.constant 2 : i32
      %121 = arith.addi %arg11, %c2_i32_92 : i32
      %122 = arith.index_cast %121 : i32 to index
      %c1_93 = arith.constant 1 : index
      %c0_94 = arith.constant 0 : index
      %123 = vector.load %arg8[%122, %c1_93, %c0_94] : memref<10x10x8xbf16, #tpu.memory_space<vmem>>, vector<1x8x8xbf16>
      %124 = vector.shape_cast %123 : vector<1x8x8xbf16> to vector<8x8xbf16>
      %c7 = arith.constant 7 : index
      %c0_95 = arith.constant 0 : index
      %c0_96 = arith.constant 0 : index
      %125 = vector.load %arg4[%c7, %c0_95, %c0_96] : memref<9x8x128xbf16, #tpu.memory_space<vmem>>, vector<1x8x128xbf16>
      %126 = vector.shape_cast %125 : vector<1x8x128xbf16> to vector<8x128xbf16>
      %cst_97 = arith.constant dense<0.000000e+00> : vector<8x128xf32>
      %127 = tpu.matmul %124, %126, %cst_97 {dimension_numbers = #tpu.dot_dimension_numbers<[1], [0], [0], [1], [0, 0, 1, 1], [], []>} : vector<8x8xbf16>, vector<8x128xbf16>, vector<8x128xf32> -> vector<8x128xf32>
      %128 = arith.addf %120, %127 : vector<8x128xf32>
      %c2_i32_98 = arith.constant 2 : i32
      %129 = arith.addi %arg11, %c2_i32_98 : i32
      %130 = arith.index_cast %129 : i32 to index
      %c2_99 = arith.constant 2 : index
      %c0_100 = arith.constant 0 : index
      %131 = vector.load %arg8[%130, %c2_99, %c0_100] : memref<10x10x8xbf16, #tpu.memory_space<vmem>>, vector<1x8x8xbf16>
      %132 = vector.shape_cast %131 : vector<1x8x8xbf16> to vector<8x8xbf16>
      %c8 = arith.constant 8 : index
      %c0_101 = arith.constant 0 : index
      %c0_102 = arith.constant 0 : index
      %133 = vector.load %arg4[%c8, %c0_101, %c0_102] : memref<9x8x128xbf16, #tpu.memory_space<vmem>>, vector<1x8x128xbf16>
      %134 = vector.shape_cast %133 : vector<1x8x128xbf16> to vector<8x128xbf16>
      %cst_103 = arith.constant dense<0.000000e+00> : vector<8x128xf32>
      %135 = tpu.matmul %132, %134, %cst_103 {dimension_numbers = #tpu.dot_dimension_numbers<[1], [0], [0], [1], [0, 0, 1, 1], [], []>} : vector<8x8xbf16>, vector<8x128xbf16>, vector<8x128xf32> -> vector<8x128xf32>
      %136 = arith.addf %128, %135 : vector<8x128xf32>
      %137 = vector.broadcast %6 : vector<1x128xf32> to vector<8x128xf32>
      %138 = arith.addf %136, %137 : vector<8x128xf32>
      %139 = vector.extract_strided_slice %138 {offsets = [0, 0], sizes = [8, 64], strides = [1, 1]} : vector<8x128xf32> to vector<8x64xf32>
      %140 = vector.extract_strided_slice %138 {offsets = [0, 64], sizes = [8, 64], strides = [1, 1]} : vector<8x128xf32> to vector<8x64xf32>
      %141 = arith.negf %140 : vector<8x64xf32>
      %142 = math.exp %141 : vector<8x64xf32>
      %cst_104 = arith.constant 1.000000e+00 : f32
      %143 = vector.broadcast %cst_104 : f32 to vector<8x64xf32>
      %144 = arith.addf %143, %142 : vector<8x64xf32>
      %145 = arith.divf %143, %144 : vector<8x64xf32>
      %146 = arith.mulf %139, %145 : vector<8x64xf32>
      %c8_i32_105 = arith.constant 8 : i32
      %147 = arith.muli %arg11, %c8_i32_105 : i32
      %148 = tpu.assume_multiple %147, 8 : i32
      %149 = vector.extract_strided_slice %146 {offsets = [0, 0], sizes = [8, 8], strides = [1, 1]} : vector<8x64xf32> to vector<8x8xf32>
      %150 = arith.index_cast %148 : i32 to index
      %c0_106 = arith.constant 0 : index
      %151 = vector.load %arg10[%150, %c0_106] : memref<64x8xf32, #tpu.memory_space<vmem>>, vector<8x8xf32>
      tpu.vector_store %arg10[%150, %c0_106], %149 {strides = array<i32>} : memref<64x8xf32, #tpu.memory_space<vmem>>, vector<8x8xf32>,
    }
    %c8_i32_13 = arith.constant 8 : i32
    %c0_14 = arith.constant 0 : index
    %c0_15 = arith.constant 0 : index
    %8 = vector.load %arg10[%c0_14, %c0_15] : memref<64x8xf32, #tpu.memory_space<vmem>>, vector<64x8xf32>
    %cst_16 = arith.constant dense<0.000000e+00> : vector<8xf32>
    %9 = vector.multi_reduction <add>, %8, %cst_16 [0] : vector<64x8xf32> to vector<8xf32>
    %10 = vector.shape_cast %9 : vector<8xf32> to vector<1x8xf32>
    %cst_17 = arith.constant 6.400000e+01 : f32
    %11 = vector.broadcast %cst_17 : f32 to vector<1x8xf32>
    %12 = arith.divf %10, %11 : vector<1x8xf32>
    %13 = vector.broadcast %12 : vector<1x8xf32> to vector<64x8xf32>
    %14 = arith.subf %8, %13 : vector<64x8xf32>
    %15 = arith.mulf %14, %14 : vector<64x8xf32>
    %cst_18 = arith.constant dense<0.000000e+00> : vector<8xf32>
    %16 = vector.multi_reduction <add>, %15, %cst_18 [0] : vector<64x8xf32> to vector<8xf32>
    %17 = vector.shape_cast %16 : vector<8xf32> to vector<1x8xf32>
    %cst_19 = arith.constant 6.400000e+01 : f32
    %18 = vector.broadcast %cst_19 : f32 to vector<1x8xf32>
    %19 = arith.divf %17, %18 : vector<1x8xf32>
    %20 = vector.broadcast %12 : vector<1x8xf32> to vector<64x8xf32>
    %21 = arith.subf %8, %20 : vector<64x8xf32>
    %cst_20 = arith.constant 9.99999974E-6 : f32
    %22 = vector.broadcast %cst_20 : f32 to vector<1x8xf32>
    %23 = arith.addf %19, %22 : vector<1x8xf32>
    %24 = math.rsqrt %23 : vector<1x8xf32>
    %25 = vector.broadcast %24 : vector<1x8xf32> to vector<64x8xf32>
    %26 = arith.mulf %21, %25 : vector<64x8xf32>
    %cst_21 = arith.constant 0.000000e+00 : f32
    %27 = vector.broadcast %cst_21 : f32 to vector<64x8xf32>
    %28 = arith.cmpf oge, %26, %27 : vector<64x8xf32>
    %cst_22 = arith.constant 1.000000e-01 : f32
    %29 = vector.broadcast %cst_22 : f32 to vector<64x8xf32>
    %30 = arith.mulf %29, %26 : vector<64x8xf32>
    %31 = arith.select %28, %26, %30 : vector<64x8xi1>, vector<64x8xf32>
    %c0_23 = arith.constant 0 : index
    %c0_24 = arith.constant 0 : index
    %32 = vector.load %arg10[%c0_23, %c0_24] : memref<64x8xf32, #tpu.memory_space<vmem>>, vector<64x8xf32>
    tpu.vector_store %arg10[%c0_23, %c0_24], %31 {strides = array<i32>} : memref<64x8xf32, #tpu.memory_space<vmem>>, vector<64x8xf32>,
    %c0_i32_25 = arith.constant 0 : i32
    %c8_i32_26 = arith.constant 8 : i32
    %33 = arith.addi %c0_i32_25, %c8_i32_26 : i32
    %c1_i32_27 = arith.constant 1 : i32
    scf.for %arg11 = %c0_i32_25 to %33 step %c1_i32_27  : i32 {
      %c8_i32_47 = arith.constant 8 : i32
      %64 = arith.muli %arg11, %c8_i32_47 : i32
      %65 = tpu.assume_multiple %64, 8 : i32
      %66 = arith.index_cast %65 : i32 to index
      %c0_48 = arith.constant 0 : index
      %67 = vector.load %arg10[%66, %c0_48] : memref<64x8xf32, #tpu.memory_space<vmem>>, vector<8x8xf32>
      %68 = arith.truncf %67 : vector<8x8xf32> to vector<8x8xbf16>
      %c1_i32_49 = arith.constant 1 : i32
      %69 = arith.addi %arg11, %c1_i32_49 : i32
      %70 = arith.index_cast %69 : i32 to index
      %c1_50 = arith.constant 1 : index
      %c0_51 = arith.constant 0 : index
      %71 = vector.load %arg9[%70, %c1_50, %c0_51] : memref<10x10x8xbf16, #tpu.memory_space<vmem>>, vector<1x8x8xbf16>
      %72 = vector.shape_cast %71 : vector<1x8x8xbf16> to vector<8x8xbf16>
      %73 = vector.shape_cast %68 : vector<8x8xbf16> to vector<1x8x8xbf16>
      tpu.vector_store %arg9[%70, %c1_50, %c0_51], %73 {strides = array<i32>} : memref<10x10x8xbf16, #tpu.memory_space<vmem>>, vector<1x8x8xbf16>,
    }
    %c8_i32_28 = arith.constant 8 : i32
    %c2 = arith.constant 2 : index
    %c0_29 = arith.constant 0 : index
    %34 = vector.load %arg6[%c2, %c0_29] : memref<3x128xf32, #tpu.memory_space<vmem>>, vector<1x128xf32>
    %c0_i32_30 = arith.constant 0 : i32
    %c8_i32_31 = arith.constant 8 : i32
    %35 = arith.addi %c0_i32_30, %c8_i32_31 : i32
    %c1_i32_32 = arith.constant 1 : i32
    scf.for %arg11 = %c0_i32_30 to %35 step %c1_i32_32  : i32 {
      %cst_47 = arith.constant 0.000000e+00 : f32
      %64 = vector.broadcast %cst_47 : f32 to vector<8x128xf32>
      %c0_i32_48 = arith.constant 0 : i32
      %65 = arith.addi %arg11, %c0_i32_48 : i32
      %66 = arith.index_cast %65 : i32 to index
      %c0_49 = arith.constant 0 : index
      %c0_50 = arith.constant 0 : index
      %67 = vector.load %arg9[%66, %c0_49, %c0_50] : memref<10x10x8xbf16, #tpu.memory_space<vmem>>, vector<1x8x8xbf16>
      %68 = vector.shape_cast %67 : vector<1x8x8xbf16> to vector<8x8xbf16>
      %c0_51 = arith.constant 0 : index
      %c0_52 = arith.constant 0 : index
      %c0_53 = arith.constant 0 : index
      %69 = vector.load %arg5[%c0_51, %c0_52, %c0_53] : memref<9x8x128xbf16, #tpu.memory_space<vmem>>, vector<1x8x128xbf16>
      %70 = vector.shape_cast %69 : vector<1x8x128xbf16> to vector<8x128xbf16>
      %cst_54 = arith.constant dense<0.000000e+00> : vector<8x128xf32>
      %71 = tpu.matmul %68, %70, %cst_54 {dimension_numbers = #tpu.dot_dimension_numbers<[1], [0], [0], [1], [0, 0, 1, 1], [], []>} : vector<8x8xbf16>, vector<8x128xbf16>, vector<8x128xf32> -> vector<8x128xf32>
      %72 = arith.addf %64, %71 : vector<8x128xf32>
      %c0_i32_55 = arith.constant 0 : i32
      %73 = arith.addi %arg11, %c0_i32_55 : i32
      %74 = arith.index_cast %73 : i32 to index
      %c1_56 = arith.constant 1 : index
      %c0_57 = arith.constant 0 : index
      %75 = vector.load %arg9[%74, %c1_56, %c0_57] : memref<10x10x8xbf16, #tpu.memory_space<vmem>>, vector<1x8x8xbf16>
      %76 = vector.shape_cast %75 : vector<1x8x8xbf16> to vector<8x8xbf16>
      %c1_58 = arith.constant 1 : index
      %c0_59 = arith.constant 0 : index
      %c0_60 = arith.constant 0 : index
      %77 = vector.load %arg5[%c1_58, %c0_59, %c0_60] : memref<9x8x128xbf16, #tpu.memory_space<vmem>>, vector<1x8x128xbf16>
      %78 = vector.shape_cast %77 : vector<1x8x128xbf16> to vector<8x128xbf16>
      %cst_61 = arith.constant dense<0.000000e+00> : vector<8x128xf32>
      %79 = tpu.matmul %76, %78, %cst_61 {dimension_numbers = #tpu.dot_dimension_numbers<[1], [0], [0], [1], [0, 0, 1, 1], [], []>} : vector<8x8xbf16>, vector<8x128xbf16>, vector<8x128xf32> -> vector<8x128xf32>
      %80 = arith.addf %72, %79 : vector<8x128xf32>
      %c0_i32_62 = arith.constant 0 : i32
      %81 = arith.addi %arg11, %c0_i32_62 : i32
      %82 = arith.index_cast %81 : i32 to index
      %c2_63 = arith.constant 2 : index
      %c0_64 = arith.constant 0 : index
      %83 = vector.load %arg9[%82, %c2_63, %c0_64] : memref<10x10x8xbf16, #tpu.memory_space<vmem>>, vector<1x8x8xbf16>
      %84 = vector.shape_cast %83 : vector<1x8x8xbf16> to vector<8x8xbf16>
      %c2_65 = arith.constant 2 : index
      %c0_66 = arith.constant 0 : index
      %c0_67 = arith.constant 0 : index
      %85 = vector.load %arg5[%c2_65, %c0_66, %c0_67] : memref<9x8x128xbf16, #tpu.memory_space<vmem>>, vector<1x8x128xbf16>
      %86 = vector.shape_cast %85 : vector<1x8x128xbf16> to vector<8x128xbf16>
      %cst_68 = arith.constant dense<0.000000e+00> : vector<8x128xf32>
      %87 = tpu.matmul %84, %86, %cst_68 {dimension_numbers = #tpu.dot_dimension_numbers<[1], [0], [0], [1], [0, 0, 1, 1], [], []>} : vector<8x8xbf16>, vector<8x128xbf16>, vector<8x128xf32> -> vector<8x128xf32>
      %88 = arith.addf %80, %87 : vector<8x128xf32>
      %c1_i32_69 = arith.constant 1 : i32
      %89 = arith.addi %arg11, %c1_i32_69 : i32
      %90 = arith.index_cast %89 : i32 to index
      %c0_70 = arith.constant 0 : index
      %c0_71 = arith.constant 0 : index
      %91 = vector.load %arg9[%90, %c0_70, %c0_71] : memref<10x10x8xbf16, #tpu.memory_space<vmem>>, vector<1x8x8xbf16>
      %92 = vector.shape_cast %91 : vector<1x8x8xbf16> to vector<8x8xbf16>
      %c3 = arith.constant 3 : index
      %c0_72 = arith.constant 0 : index
      %c0_73 = arith.constant 0 : index
      %93 = vector.load %arg5[%c3, %c0_72, %c0_73] : memref<9x8x128xbf16, #tpu.memory_space<vmem>>, vector<1x8x128xbf16>
      %94 = vector.shape_cast %93 : vector<1x8x128xbf16> to vector<8x128xbf16>
      %cst_74 = arith.constant dense<0.000000e+00> : vector<8x128xf32>
      %95 = tpu.matmul %92, %94, %cst_74 {dimension_numbers = #tpu.dot_dimension_numbers<[1], [0], [0], [1], [0, 0, 1, 1], [], []>} : vector<8x8xbf16>, vector<8x128xbf16>, vector<8x128xf32> -> vector<8x128xf32>
      %96 = arith.addf %88, %95 : vector<8x128xf32>
      %c1_i32_75 = arith.constant 1 : i32
      %97 = arith.addi %arg11, %c1_i32_75 : i32
      %98 = arith.index_cast %97 : i32 to index
      %c1_76 = arith.constant 1 : index
      %c0_77 = arith.constant 0 : index
      %99 = vector.load %arg9[%98, %c1_76, %c0_77] : memref<10x10x8xbf16, #tpu.memory_space<vmem>>, vector<1x8x8xbf16>
      %100 = vector.shape_cast %99 : vector<1x8x8xbf16> to vector<8x8xbf16>
      %c4 = arith.constant 4 : index
      %c0_78 = arith.constant 0 : index
      %c0_79 = arith.constant 0 : index
      %101 = vector.load %arg5[%c4, %c0_78, %c0_79] : memref<9x8x128xbf16, #tpu.memory_space<vmem>>, vector<1x8x128xbf16>
      %102 = vector.shape_cast %101 : vector<1x8x128xbf16> to vector<8x128xbf16>
      %cst_80 = arith.constant dense<0.000000e+00> : vector<8x128xf32>
      %103 = tpu.matmul %100, %102, %cst_80 {dimension_numbers = #tpu.dot_dimension_numbers<[1], [0], [0], [1], [0, 0, 1, 1], [], []>} : vector<8x8xbf16>, vector<8x128xbf16>, vector<8x128xf32> -> vector<8x128xf32>
      %104 = arith.addf %96, %103 : vector<8x128xf32>
      %c1_i32_81 = arith.constant 1 : i32
      %105 = arith.addi %arg11, %c1_i32_81 : i32
      %106 = arith.index_cast %105 : i32 to index
      %c2_82 = arith.constant 2 : index
      %c0_83 = arith.constant 0 : index
      %107 = vector.load %arg9[%106, %c2_82, %c0_83] : memref<10x10x8xbf16, #tpu.memory_space<vmem>>, vector<1x8x8xbf16>
      %108 = vector.shape_cast %107 : vector<1x8x8xbf16> to vector<8x8xbf16>
      %c5 = arith.constant 5 : index
      %c0_84 = arith.constant 0 : index
      %c0_85 = arith.constant 0 : index
      %109 = vector.load %arg5[%c5, %c0_84, %c0_85] : memref<9x8x128xbf16, #tpu.memory_space<vmem>>, vector<1x8x128xbf16>
      %110 = vector.shape_cast %109 : vector<1x8x128xbf16> to vector<8x128xbf16>
      %cst_86 = arith.constant dense<0.000000e+00> : vector<8x128xf32>
      %111 = tpu.matmul %108, %110, %cst_86 {dimension_numbers = #tpu.dot_dimension_numbers<[1], [0], [0], [1], [0, 0, 1, 1], [], []>} : vector<8x8xbf16>, vector<8x128xbf16>, vector<8x128xf32> -> vector<8x128xf32>
      %112 = arith.addf %104, %111 : vector<8x128xf32>
      %c2_i32 = arith.constant 2 : i32
      %113 = arith.addi %arg11, %c2_i32 : i32
      %114 = arith.index_cast %113 : i32 to index
      %c0_87 = arith.constant 0 : index
      %c0_88 = arith.constant 0 : index
      %115 = vector.load %arg9[%114, %c0_87, %c0_88] : memref<10x10x8xbf16, #tpu.memory_space<vmem>>, vector<1x8x8xbf16>
      %116 = vector.shape_cast %115 : vector<1x8x8xbf16> to vector<8x8xbf16>
      %c6 = arith.constant 6 : index
      %c0_89 = arith.constant 0 : index
      %c0_90 = arith.constant 0 : index
      %117 = vector.load %arg5[%c6, %c0_89, %c0_90] : memref<9x8x128xbf16, #tpu.memory_space<vmem>>, vector<1x8x128xbf16>
      %118 = vector.shape_cast %117 : vector<1x8x128xbf16> to vector<8x128xbf16>
      %cst_91 = arith.constant dense<0.000000e+00> : vector<8x128xf32>
      %119 = tpu.matmul %116, %118, %cst_91 {dimension_numbers = #tpu.dot_dimension_numbers<[1], [0], [0], [1], [0, 0, 1, 1], [], []>} : vector<8x8xbf16>, vector<8x128xbf16>, vector<8x128xf32> -> vector<8x128xf32>
      %120 = arith.addf %112, %119 : vector<8x128xf32>
      %c2_i32_92 = arith.constant 2 : i32
      %121 = arith.addi %arg11, %c2_i32_92 : i32
      %122 = arith.index_cast %121 : i32 to index
      %c1_93 = arith.constant 1 : index
      %c0_94 = arith.constant 0 : index
      %123 = vector.load %arg9[%122, %c1_93, %c0_94] : memref<10x10x8xbf16, #tpu.memory_space<vmem>>, vector<1x8x8xbf16>
      %124 = vector.shape_cast %123 : vector<1x8x8xbf16> to vector<8x8xbf16>
      %c7 = arith.constant 7 : index
      %c0_95 = arith.constant 0 : index
      %c0_96 = arith.constant 0 : index
      %125 = vector.load %arg5[%c7, %c0_95, %c0_96] : memref<9x8x128xbf16, #tpu.memory_space<vmem>>, vector<1x8x128xbf16>
      %126 = vector.shape_cast %125 : vector<1x8x128xbf16> to vector<8x128xbf16>
      %cst_97 = arith.constant dense<0.000000e+00> : vector<8x128xf32>
      %127 = tpu.matmul %124, %126, %cst_97 {dimension_numbers = #tpu.dot_dimension_numbers<[1], [0], [0], [1], [0, 0, 1, 1], [], []>} : vector<8x8xbf16>, vector<8x128xbf16>, vector<8x128xf32> -> vector<8x128xf32>
      %128 = arith.addf %120, %127 : vector<8x128xf32>
      %c2_i32_98 = arith.constant 2 : i32
      %129 = arith.addi %arg11, %c2_i32_98 : i32
      %130 = arith.index_cast %129 : i32 to index
      %c2_99 = arith.constant 2 : index
      %c0_100 = arith.constant 0 : index
      %131 = vector.load %arg9[%130, %c2_99, %c0_100] : memref<10x10x8xbf16, #tpu.memory_space<vmem>>, vector<1x8x8xbf16>
      %132 = vector.shape_cast %131 : vector<1x8x8xbf16> to vector<8x8xbf16>
      %c8 = arith.constant 8 : index
      %c0_101 = arith.constant 0 : index
      %c0_102 = arith.constant 0 : index
      %133 = vector.load %arg5[%c8, %c0_101, %c0_102] : memref<9x8x128xbf16, #tpu.memory_space<vmem>>, vector<1x8x128xbf16>
      %134 = vector.shape_cast %133 : vector<1x8x128xbf16> to vector<8x128xbf16>
      %cst_103 = arith.constant dense<0.000000e+00> : vector<8x128xf32>
      %135 = tpu.matmul %132, %134, %cst_103 {dimension_numbers = #tpu.dot_dimension_numbers<[1], [0], [0], [1], [0, 0, 1, 1], [], []>} : vector<8x8xbf16>, vector<8x128xbf16>, vector<8x128xf32> -> vector<8x128xf32>
      %136 = arith.addf %128, %135 : vector<8x128xf32>
      %137 = vector.broadcast %34 : vector<1x128xf32> to vector<8x128xf32>
      %138 = arith.addf %136, %137 : vector<8x128xf32>
      %139 = vector.extract_strided_slice %138 {offsets = [0, 0], sizes = [8, 64], strides = [1, 1]} : vector<8x128xf32> to vector<8x64xf32>
      %140 = vector.extract_strided_slice %138 {offsets = [0, 64], sizes = [8, 64], strides = [1, 1]} : vector<8x128xf32> to vector<8x64xf32>
      %141 = arith.negf %140 : vector<8x64xf32>
      %142 = math.exp %141 : vector<8x64xf32>
      %cst_104 = arith.constant 1.000000e+00 : f32
      %143 = vector.broadcast %cst_104 : f32 to vector<8x64xf32>
      %144 = arith.addf %143, %142 : vector<8x64xf32>
      %145 = arith.divf %143, %144 : vector<8x64xf32>
      %146 = arith.mulf %139, %145 : vector<8x64xf32>
      %c8_i32_105 = arith.constant 8 : i32
      %147 = arith.muli %arg11, %c8_i32_105 : i32
      %148 = tpu.assume_multiple %147, 8 : i32
      %149 = vector.extract_strided_slice %146 {offsets = [0, 0], sizes = [8, 8], strides = [1, 1]} : vector<8x64xf32> to vector<8x8xf32>
      %c0_106 = arith.constant 0 : index
      %150 = arith.index_cast %148 : i32 to index
      %c0_107 = arith.constant 0 : index
      %151 = vector.load %arg7[%c0_106, %150, %c0_107] : memref<1x64x8xf32, #tpu.memory_space<vmem>>, vector<1x8x8xf32>
      %152 = vector.shape_cast %151 : vector<1x8x8xf32> to vector<8x8xf32>
      %153 = vector.shape_cast %149 : vector<8x8xf32> to vector<1x8x8xf32>
      tpu.vector_store %arg7[%c0_106, %150, %c0_107], %153 {strides = array<i32>} : memref<1x64x8xf32, #tpu.memory_space<vmem>>, vector<1x8x8xf32>,
    }
    %c8_i32_33 = arith.constant 8 : i32
    %c0_34 = arith.constant 0 : index
    %c0_35 = arith.constant 0 : index
    %c0_36 = arith.constant 0 : index
    %36 = vector.load %arg7[%c0_34, %c0_35, %c0_36] : memref<1x64x8xf32, #tpu.memory_space<vmem>>, vector<1x64x8xf32>
    %37 = vector.shape_cast %36 : vector<1x64x8xf32> to vector<64x8xf32>
    %cst_37 = arith.constant dense<0.000000e+00> : vector<8xf32>
    %38 = vector.multi_reduction <add>, %37, %cst_37 [0] : vector<64x8xf32> to vector<8xf32>
    %39 = vector.shape_cast %38 : vector<8xf32> to vector<1x8xf32>
    %cst_38 = arith.constant 6.400000e+01 : f32
    %40 = vector.broadcast %cst_38 : f32 to vector<1x8xf32>
    %41 = arith.divf %39, %40 : vector<1x8xf32>
    %42 = vector.broadcast %41 : vector<1x8xf32> to vector<64x8xf32>
    %43 = arith.subf %37, %42 : vector<64x8xf32>
    %44 = arith.mulf %43, %43 : vector<64x8xf32>
    %cst_39 = arith.constant dense<0.000000e+00> : vector<8xf32>
    %45 = vector.multi_reduction <add>, %44, %cst_39 [0] : vector<64x8xf32> to vector<8xf32>
    %46 = vector.shape_cast %45 : vector<8xf32> to vector<1x8xf32>
    %cst_40 = arith.constant 6.400000e+01 : f32
    %47 = vector.broadcast %cst_40 : f32 to vector<1x8xf32>
    %48 = arith.divf %46, %47 : vector<1x8xf32>
    %49 = vector.broadcast %41 : vector<1x8xf32> to vector<64x8xf32>
    %50 = arith.subf %37, %49 : vector<64x8xf32>
    %cst_41 = arith.constant 9.99999974E-6 : f32
    %51 = vector.broadcast %cst_41 : f32 to vector<1x8xf32>
    %52 = arith.addf %48, %51 : vector<1x8xf32>
    %53 = math.rsqrt %52 : vector<1x8xf32>
    %54 = vector.broadcast %53 : vector<1x8xf32> to vector<64x8xf32>
    %55 = arith.mulf %50, %54 : vector<64x8xf32>
    %cst_42 = arith.constant 0.000000e+00 : f32
    %56 = vector.broadcast %cst_42 : f32 to vector<64x8xf32>
    %57 = arith.cmpf oge, %55, %56 : vector<64x8xf32>
    %cst_43 = arith.constant 1.000000e-01 : f32
    %58 = vector.broadcast %cst_43 : f32 to vector<64x8xf32>
    %59 = arith.mulf %58, %55 : vector<64x8xf32>
    %60 = arith.select %57, %55, %59 : vector<64x8xi1>, vector<64x8xf32>
    %c0_44 = arith.constant 0 : index
    %c0_45 = arith.constant 0 : index
    %c0_46 = arith.constant 0 : index
    %61 = vector.load %arg7[%c0_44, %c0_45, %c0_46] : memref<1x64x8xf32, #tpu.memory_space<vmem>>, vector<1x64x8xf32>
    %62 = vector.shape_cast %61 : vector<1x64x8xf32> to vector<64x8xf32>
    %63 = vector.shape_cast %60 : vector<64x8xf32> to vector<1x64x8xf32>
    tpu.vector_store %arg7[%c0_44, %c0_45, %c0_46], %63 {strides = array<i32>} : memref<1x64x8xf32, #tpu.memory_space<vmem>>, vector<1x64x8xf32>,
    return
  }
  func.func @transform_0(%arg0: i32) -> (i32, i32, i32, i32) {
    %c0_i32 = arith.constant 0 : i32
    %c0_i32_0 = arith.constant 0 : i32
    %c0_i32_1 = arith.constant 0 : i32
    %c0_i32_2 = arith.constant 0 : i32
    return %arg0, %c0_i32, %c0_i32_0, %c0_i32_1 : i32, i32, i32, i32
  }
  func.func @transform_1(%arg0: i32) -> (i32, i32, i32, i32) {
    %c0_i32 = arith.constant 0 : i32
    %c0_i32_0 = arith.constant 0 : i32
    %c0_i32_1 = arith.constant 0 : i32
    %c0_i32_2 = arith.constant 0 : i32
    return %arg0, %c0_i32, %c0_i32_0, %c0_i32_1 : i32, i32, i32, i32
  }
  func.func @transform_2(%arg0: i32) -> (i32, i32, i32) {
    %c0_i32 = arith.constant 0 : i32
    %c0_i32_0 = arith.constant 0 : i32
    %c0_i32_1 = arith.constant 0 : i32
    %c0_i32_2 = arith.constant 0 : i32
    return %c0_i32, %c0_i32_0, %c0_i32_1 : i32, i32, i32
  }
  func.func @transform_3(%arg0: i32) -> (i32, i32, i32) {
    %c0_i32 = arith.constant 0 : i32
    %c0_i32_0 = arith.constant 0 : i32
    %c0_i32_1 = arith.constant 0 : i32
    %c0_i32_2 = arith.constant 0 : i32
    return %c0_i32, %c0_i32_0, %c0_i32_1 : i32, i32, i32
  }
  func.func @transform_4(%arg0: i32) -> (i32, i32, i32) {
    %c0_i32 = arith.constant 0 : i32
    %c0_i32_0 = arith.constant 0 : i32
    %c0_i32_1 = arith.constant 0 : i32
    %c0_i32_2 = arith.constant 0 : i32
    return %c0_i32, %c0_i32_0, %c0_i32_1 : i32, i32, i32
  }
  func.func @transform_5(%arg0: i32) -> (i32, i32) {
    %c0_i32 = arith.constant 0 : i32
    %c0_i32_0 = arith.constant 0 : i32
    %c0_i32_1 = arith.constant 0 : i32
    return %c0_i32, %c0_i32_0 : i32, i32
  }
  func.func @transform_6(%arg0: i32) -> (i32, i32, i32) {
    %c0_i32 = arith.constant 0 : i32
    %c0_i32_0 = arith.constant 0 : i32
    %c0_i32_1 = arith.constant 0 : i32
    return %arg0, %c0_i32, %c0_i32_0 : i32, i32, i32
  }
}

</mosaic_0001>

<bundles_post_ra>
// kernel: down_forward.1
= control target key start
LH: loop header
LB: loop body
LE: loop exit
PB: predicated region body
PF: predicated region fallthrough
CT: control target
= control target key end

     0   :  { %s3403_s21 = smov 0   ;;  %s3938_s0 = inlined_call_operand.vmem [shape: bf16[2,18,9,8], index: 0, kind: input, shape index: {}]   ;;  %s3939_s1 = inlined_call_operand.vmem [shape: bf16[2,18,9,8], index: 1, kind: input, shape index: {}]   ;;  %s3940_s2 = inlined_call_operand.vmem [shape: bf16[16,8,128], index: 2, kind: input, shape index: {}]   ;;  %s3941_s3 = inlined_call_operand.vmem [shape: bf16[9,8,128], index: 3, kind: input, shape index: {}]   ;;  %s3942_s4 = inlined_call_operand.vmem [shape: bf16[9,8,128], index: 4, kind: input, shape index: {}]   ;;  %s3943_s5 = inlined_call_operand.vmem [shape: f32[3,128], index: 5, kind: input, shape index: {}]   ;;  %s3944_s6 = inlined_call_operand.vmem [shape: f32[2,64,8], index: 6, kind: output, shape index: {}]  }
   0x1 LB: > { %s2770_s22 = sadd.s32 4294967295, %s3340_s21   ;;  %p2774_p0 = scmp.ge.s32.totalorder %s3340_s21, 1  ;;  %s3340_s21 = sphi %s3403_s21, %s16_s21  }
   0x2   : > { %p222_p1 = scmp.lt.s32.totalorder %s3340_s21, 3 }
   0x4   : > { %p223_p2 = pnand %p2774_p0, %p222_p1 }
   0x5   : > { %p3413_p3 = scmp.lt.s32.totalorder (!%p223_p2), %s2770_s22, 1  ;;  %s3481_s13 = smov (!%p223_p2), 0  }
   0x6   : > { %226 = sbr.rel (%p223_p2) target bundleno = 1448 (0x5a8), region = 44 }
   0xb   : > { %vm273_vm0 = vcmask 60416   ;;  %vm275_vm1 = vcmask 57344   ;;  %v3420_v0 = vld [vmem:[%s3943_s5] ss:$0 sm:$0xff]  ;;  %v3358_v1 = vmov 0   ;;  %s3951_s22 = smov (!%p3413_p3, %s2770_s22), 1 }
   0xc   : > { %274 = vst.msk [vmem:[#allocation2] sm:$0xf] %vm273_vm0, %v3358_v1  ;;  %277 = vst.msk [vmem:[#allocation2 + $0x8] sm:$0xf] %vm273_vm0, %v3358_v1  ;;  %s3231_s26 = smul.u32 144, %s3951_s22  ;;  %s2945_s27 = sshll.u32 %s3951_s22, 6 }
   0xd   : > { %279 = vst.msk [vmem:[#allocation2 + $0x10] sm:$0xf] %vm273_vm0, %v3358_v1  ;;  %281 = vst.msk [vmem:[#allocation2 + $0x18] sm:$0xf] %vm273_vm0, %v3358_v1  ;;  %s3469_s30 = scalar_lea.vmem %s3944_s6, %s2945_s27 }
   0xe   : > { %283 = vst.msk [vmem:[#allocation2 + $0x20] sm:$0xf] %vm273_vm0, %v3358_v1  ;;  %285 = vst.msk [vmem:[#allocation2 + $0x28] sm:$0xf] %vm273_vm0, %v3358_v1  ;;  %s3474_s9 = scalar_lea.vmem %s3938_s0, %s3231_s26  ;;  %s3479_s12 = scalar_lea.vmem %s3939_s1, %s3231_s26 }
   0xf   : > { %287 = vst.msk [vmem:[#allocation2 + $0x30] sm:$0xf] %vm273_vm0, %v3358_v1  ;;  %289 = vst.msk [vmem:[#allocation2 + $0x38] sm:$0xf] %vm273_vm0, %v3358_v1 }
  0x10   : > { %291 = vst.msk [vmem:[#allocation2 + $0x40] sm:$0xf] %vm273_vm0, %v3358_v1  ;;  %293 = vst.msk [vmem:[#allocation2 + $0x48] sm:$0xf] %vm273_vm0, %v3358_v1 }
  0x11   : > { %295 = vst.msk [vmem:[#allocation3] sm:$0xf] %vm273_vm0, %v3358_v1  ;;  %297 = vst.msk [vmem:[#allocation3 + $0x8] sm:$0xf] %vm273_vm0, %v3358_v1 }
  0x12   : > { %299 = vst.msk [vmem:[#allocation3 + $0x10] sm:$0xf] %vm273_vm0, %v3358_v1  ;;  %301 = vst.msk [vmem:[#allocation3 + $0x18] sm:$0xf] %vm273_vm0, %v3358_v1 }
  0x13   : > { %303 = vst.msk [vmem:[#allocation3 + $0x20] sm:$0xf] %vm273_vm0, %v3358_v1  ;;  %305 = vst.msk [vmem:[#allocation3 + $0x28] sm:$0xf] %vm273_vm0, %v3358_v1 }
  0x14   : > { %307 = vst.msk [vmem:[#allocation3 + $0x30] sm:$0xf] %vm273_vm0, %v3358_v1  ;;  %309 = vst.msk [vmem:[#allocation3 + $0x38] sm:$0xf] %vm273_vm0, %v3358_v1 }
  0x15   : > { %311 = vst.msk [vmem:[#allocation3 + $0x40] sm:$0xf] %vm273_vm0, %v3358_v1  ;;  %313 = vst.msk [vmem:[#allocation3 + $0x48] sm:$0xf] %vm273_vm0, %v3358_v1 }
  0x16   : > { %276 = vst.msk [vmem:[#allocation2 + $0x4] sm:$0x1] %vm275_vm1, %v3358_v1  ;;  %278 = vst.msk [vmem:[#allocation2 + $0xc] sm:$0x1] %vm275_vm1, %v3358_v1 }
  0x17   : > { %280 = vst.msk [vmem:[#allocation2 + $0x14] sm:$0x1] %vm275_vm1, %v3358_v1  ;;  %282 = vst.msk [vmem:[#allocation2 + $0x1c] sm:$0x1] %vm275_vm1, %v3358_v1 }
  0x18   : > { %284 = vst.msk [vmem:[#allocation2 + $0x24] sm:$0x1] %vm275_vm1, %v3358_v1  ;;  %286 = vst.msk [vmem:[#allocation2 + $0x2c] sm:$0x1] %vm275_vm1, %v3358_v1 }
  0x19   : > { %288 = vst.msk [vmem:[#allocation2 + $0x34] sm:$0x1] %vm275_vm1, %v3358_v1  ;;  %290 = vst.msk [vmem:[#allocation2 + $0x3c] sm:$0x1] %vm275_vm1, %v3358_v1 }
  0x1a   : > { %292 = vst.msk [vmem:[#allocation2 + $0x44] sm:$0x1] %vm275_vm1, %v3358_v1  ;;  %294 = vst.msk [vmem:[#allocation2 + $0x4c] sm:$0x1] %vm275_vm1, %v3358_v1 }
  0x1b   : > { %296 = vst.msk [vmem:[#allocation3 + $0x4] sm:$0x1] %vm275_vm1, %v3358_v1  ;;  %298 = vst.msk [vmem:[#allocation3 + $0xc] sm:$0x1] %vm275_vm1, %v3358_v1 }
  0x1c   : > { %300 = vst.msk [vmem:[#allocation3 + $0x14] sm:$0x1] %vm275_vm1, %v3358_v1  ;;  %302 = vst.msk [vmem:[#allocation3 + $0x1c] sm:$0x1] %vm275_vm1, %v3358_v1 }
  0x1d   : > { %304 = vst.msk [vmem:[#allocation3 + $0x24] sm:$0x1] %vm275_vm1, %v3358_v1  ;;  %306 = vst.msk [vmem:[#allocation3 + $0x2c] sm:$0x1] %vm275_vm1, %v3358_v1 }
  0x1e   : > { %308 = vst.msk [vmem:[#allocation3 + $0x34] sm:$0x1] %vm275_vm1, %v3358_v1  ;;  %310 = vst.msk [vmem:[#allocation3 + $0x3c] sm:$0x1] %vm275_vm1, %v3358_v1 }
  0x1f   : > { %312 = vst.msk [vmem:[#allocation3 + $0x44] sm:$0x1] %vm275_vm1, %v3358_v1  ;;  %314 = vst.msk [vmem:[#allocation3 + $0x4c] sm:$0x1] %vm275_vm1, %v3358_v1 }
  0x20 LB: >> { %v2783_v2 = vld [vmem:[%s3940_s2 + $0x4] sm:$0xf]  ;;  %vm337_vm2 = vcmask 1043456   ;;  %v327_v3 = vld [vmem:[%s3940_s2] sm:$0xf]  ;;  %v3359_v4 = vmov 0.0   ;;  %s3344_s13 = sphi %s3481_s13, %s321_s13  }
  0x21   : >> { %3027 = vmatprep.subr.bf16.mxu0 %v3359_v4  ;;  %3033 = vmatprep.subr.bf16.mxu1 %v3359_v4  ;;  %v339_v5 = vsel %vm337_vm2, %v2783_v2, 0  ;;  %v385_v6 = vsel %vm337_vm2, %v327_v3, 0  ;;  %v2786_v7 = vld [vmem:[%s3940_s2 + $0x8] sm:$0xf]  ;;  %s2947_s20 = sshll.u32 %s3344_s13, 4  ;;  %vm333_vm3 = vcmask 64512  }
  0x22   : >> { %3028 = vmatpush3.bf16.msra.mxu0 %v339_v5  ;;  %3034 = vmatpush3.bf16.msra.mxu1 %v385_v6  ;;  %v2789_v8 = vld [vmem:[%s3940_s2 + $0xc] sm:$0xf]  ;;  %vm3360_vm4 = vmmov 0   ;;  %s3508_s24 = scalar_lea.vmem %s3479_s12, %s2947_s20  ;;  %s3511_s25 = scalar_lea.vmem %s3474_s9, %s2947_s20  ;;  %v447_v9 = vsel %vm337_vm2, %v2786_v7, 0  ;;  %v2795_v19 = vld [vmem:[%s3940_s2 + $0x10] sm:$0xf] }
  0x23   : >> { %3029 = vmatprep.mubr.msk.bf16.mxu0 %vm3360_vm4, %v3359_v4  ;;  %3035 = vmatprep.mubr.msk.bf16.mxu1 %vm3360_vm4, %v3359_v4  ;;  %v510_v10 = vsel %vm337_vm2, %v2789_v8, 0  ;;  %v330_v11 = vld [vmem:[%s3508_s24] sm:$0xf]  ;;  %v2800_v21 = vld [vmem:[%s3940_s2 + $0x14] sm:$0xf]  ;;  %v564_v24 = vsel %vm337_vm2, %v2795_v19, 0 }
  0x24   : >> { %v326_v12 = vld [vmem:[%s3511_s25] sm:$0xf]  ;;  %3039 = vmatprep.subr.bf16.mxu0 %v3359_v4  ;;  %3045 = vmatprep.subr.bf16.mxu1 %v3359_v4  ;;  %v616_v26 = vsel %vm337_vm2, %v2800_v21, 0  ;;  %v3284_v27 = vld [vmem:[%s3511_s25 + $0x8] sm:$0x1f]  }
  0x25   : >> { %3030 = vmatmul.mubr.msk.bf16.vlgmr.msra.gmra.mxu0 %vm333_vm3, %v330_v11  ;;  %3036 = vmatmul.mubr.msk.bf16.vlgmr.msra.gmra.mxu1 %vm333_vm3, %v326_v12  ;;  %v3282_v13 = vld [vmem:[%s3511_s25] sm:$0x1f]   ;;  %v3285_v28 = vld [vmem:[%s3508_s24 + $0x8] sm:$0x1f]   ;;  %v2804_v29 = vld [vmem:[%s3940_s2 + $0x18] sm:$0xf] }
  0x26   : >> { %3040 = vmatpush3.bf16.msra.mxu0 %v447_v9  ;;  %3046 = vmatpush3.bf16.msra.mxu1 %v510_v10  ;;  %v3283_v14 = vld [vmem:[%s3508_s24] sm:$0x1f]   ;;  %v437_v15 = vshrl.u32 %v3282_v13, 16  ;;  %v439_v16 = vshll.u32 %v3282_v13, 16  ;;  %v2809_v30 = vld [vmem:[%s3940_s2 + $0x1c] sm:$0xf] }
  0x27   : >> { %3041 = vmatprep.mubr.msk.bf16.mxu0 %vm3360_vm4, %v3359_v4  ;;  %3047 = vmatprep.mubr.msk.bf16.mxu1 %vm3360_vm4, %v3359_v4  ;;  %v500_v17 = vshrl.u32 %v3283_v14, 16  ;;  %v502_v18 = vshll.u32 %v3283_v14, 16  ;;  %v671_v31 = vshll.u32 %v3284_v27, 16  ;;  %v2794_v32 = vld [vmem:[%s3511_s25 + $0x8] sm:$0xf]  ;;  %v734_v33 = vshll.u32 %v3285_v28, 16 }
  0x28   : >> { %3051 = vmatprep.subr.bf16.mxu0 %v3359_v4  ;;  %3057 = vmatprep.subr.bf16.mxu1 %v3359_v4  ;;  %v441_v20 = vrot.slane %v439_v16, 1  ;;  %v2799_v34 = vld [vmem:[%s3508_s24 + $0x8] sm:$0xf]  ;;  %v679_v35 = vsel %vm337_vm2, %v2804_v29, 0  ;;  %v742_v36 = vsel %vm337_vm2, %v2809_v30, 0  ;;  %v669_v37 = vshrl.u32 %v3284_v27, 16 }
  0x29   : >> { %v504_v22 = vrot.slane %v502_v18, 1  ;;  %v673_v38 = vrot.slane %v671_v31, 1  ;;  %v732_v39 = vshrl.u32 %v3285_v28, 16  ;;  %v736_v40 = vrot.slane %v734_v33, 1  ;;  %v2815_v41 = vld [vmem:[%s3940_s2 + $0x20] sm:$0xf] }
  0x2a   : >> { %v442_v23 = vor.u32 %v441_v20, %v437_v15  ;;  %v2820_v43 = vld [vmem:[%s3940_s2 + $0x24] sm:$0xf]  ;;  %v796_v45 = vsel %vm337_vm2, %v2815_v41, 0  ;;  %v3286_v47 = vld [vmem:[%s3511_s25 + $0x10] sm:$0x1f]  }
  0x2b   : >> { %v505_v25 = vor.u32 %v504_v22, %v500_v17  ;;  %v674_v42 = vor.u32 %v673_v38, %v669_v37  ;;  %v737_v44 = vor.u32 %v736_v40, %v732_v39  ;;  %v848_v46 = vsel %vm337_vm2, %v2820_v43, 0  ;;  %v3287_v48 = vld [vmem:[%s3508_s24 + $0x10] sm:$0x1f]   ;;  %v2824_v49 = vld [vmem:[%s3940_s2 + $0x28] sm:$0xf] }
  0x2c   : >> { %v2829_v50 = vld [vmem:[%s3940_s2 + $0x2c] sm:$0xf]  ;;  %v903_v51 = vshll.u32 %v3286_v47, 16  ;;  %v2814_v52 = vld [vmem:[%s3511_s25 + $0x10] sm:$0xf]  ;;  %v966_v53 = vshll.u32 %v3287_v48, 16 }
  0x2d   : >> { %3042 = vmatmul.mubr.msk.bf16.vlgmr.msra.gmra.mxu0 %vm333_vm3, %v442_v23  ;;  %3048 = vmatmul.mubr.msk.bf16.vlgmr.msra.gmra.mxu1 %vm333_vm3, %v505_v25  ;;  %v2819_v54 = vld [vmem:[%s3508_s24 + $0x10] sm:$0xf]  ;;  %v911_v55 = vsel %vm337_vm2, %v2824_v49, 0  ;;  %v974_v56 = vsel %vm337_vm2, %v2829_v50, 0  ;;  %v901_v57 = vshrl.u32 %v3286_v47, 16  ;;  %v964_v59 = vshrl.u32 %v3287_v48, 16 }
  0x2e   : >> { %3052 = vmatpush3.bf16.msra.mxu0 %v564_v24  ;;  %3058 = vmatpush3.bf16.msra.mxu1 %v616_v26  ;;  %v905_v58 = vrot.slane %v903_v51, 1  ;;  %v968_v60 = vrot.slane %v966_v53, 1  ;;  %v2835_v61 = vld [vmem:[%s3940_s2 + $0x30] sm:$0xf]  ;;  %v2840_v63 = vld [vmem:[%s3940_s2 + $0x34] sm:$0xf] }
  0x2f   : >> { %3053 = vmatprep.mubr.msk.bf16.mxu0 %vm3360_vm4, %v3359_v4  ;;  %3059 = vmatprep.mubr.msk.bf16.mxu1 %vm3360_vm4, %v3359_v4  ;;  %v1028_v2 = vsel %vm337_vm2, %v2835_v61, 0  ;;  %v1080_v3 = vsel %vm337_vm2, %v2840_v63, 0  ;;  %v3288_v5 = vld [vmem:[%s3511_s25 + $0x18] sm:$0x1f]   ;;  %vm1284_vm5 = vsmask.f32 7938 }
  0x30   : >> { %3063 = vmatprep.subr.bf16.mxu0 %v3359_v4  ;;  %3069 = vmatprep.subr.bf16.mxu1 %v3359_v4  ;;  %v906_v62 = vor.u32 %v905_v58, %v901_v57  ;;  %v969_v1 = vor.u32 %v968_v60, %v964_v59  ;;  %v3289_v6 = vld [vmem:[%s3508_s24 + $0x18] sm:$0x1f]   ;;  %v1135_v9 = vshll.u32 %v3288_v5, 16  ;;  %v1133_v15 = vshrl.u32 %v3288_v5, 16  ;;  %vm3640_vm7 = vmand %vm273_vm0, %vm1284_vm5 }
  0x31   : >> { %v2844_v7 = vld [vmem:[%s3940_s2 + $0x38] sm:$0xf]  ;;  %v2849_v8 = vld [vmem:[%s3940_s2 + $0x3c] sm:$0xf]  ;;  %v1198_v11 = vshll.u32 %v3289_v6, 16  ;;  %v1196_v17 = vshrl.u32 %v3289_v6, 16 }
  0x32   : >> { %v2834_v10 = vld [vmem:[%s3511_s25 + $0x18] sm:$0xf]  ;;  %v1143_v13 = vsel %vm337_vm2, %v2844_v7, 0  ;;  %v1206_v14 = vsel %vm337_vm2, %v2849_v8, 0  ;;  %v1137_v16 = vrot.slane %v1135_v9, 1  ;;  %s2855_s25 = sshll.u32 %s3344_s13, 3 }
  0x33   : >> { %v2839_v12 = vld [vmem:[%s3508_s24 + $0x18] sm:$0xf]  ;;  %v1200_v18 = vrot.slane %v1198_v11, 1  ;;  %s3361_s24 = smov 64   ;;  %vm1290_vm6 = vsmask.f32 256 }
  0x34   : >> { %v1138_v19 = vor.u32 %v1137_v16, %v1133_v15  ;;  %s2693_s11 = scalar_lea.vmem [#allocation2], %s2855_s25  ;;  %vm3645_vm8 = vmand %vm275_vm1, %vm1290_vm6  ;;  %s321_s13 = sadd.s32 1, %s3344_s13  }
  0x35   : >> { %3054 = vmatmul.mubr.msk.bf16.vlgmr.msra.gmra.mxu0 %vm333_vm3, %v2794_v32  ;;  %3060 = vmatmul.mubr.msk.bf16.vlgmr.msra.gmra.mxu1 %vm333_vm3, %v2799_v34  ;;  %v1201_v20 = vor.u32 %v1200_v18, %v1196_v17  ;;  %p318_p4 = scmp.ge.s32.totalorder %s321_s13, 8  }
  0x36   : >> { %3064 = vmatpush3.bf16.msra.mxu0 %v679_v35  ;;  %3070 = vmatpush3.bf16.msra.mxu1 %v742_v36  ;;  %s3661_s16 = smov (%p318_p4), 0  }
  0x37   : >> { %3065 = vmatprep.mubr.msk.bf16.mxu0 %vm3360_vm4, %v3359_v4  ;;  %3071 = vmatprep.mubr.msk.bf16.mxu1 %vm3360_vm4, %v3359_v4 }
  0x38   : >> { %3075 = vmatprep.subr.bf16.mxu0 %v3359_v4  ;;  %3081 = vmatprep.subr.bf16.mxu1 %v3359_v4 }
  0x3d   : >> { %3066 = vmatmul.mubr.msk.bf16.vlgmr.msra.gmra.mxu0 %vm333_vm3, %v674_v42  ;;  %3072 = vmatmul.mubr.msk.bf16.vlgmr.msra.gmra.mxu1 %vm333_vm3, %v737_v44 }
  0x3e   : >> { %3076 = vmatpush3.bf16.msra.mxu0 %v796_v45  ;;  %3082 = vmatpush3.bf16.msra.mxu1 %v848_v46 }
  0x3f   : >> { %3077 = vmatprep.mubr.msk.bf16.mxu0 %vm3360_vm4, %v3359_v4  ;;  %3083 = vmatprep.mubr.msk.bf16.mxu1 %vm3360_vm4, %v3359_v4 }
  0x40   : >> { %3087 = vmatprep.subr.bf16.mxu0 %v3359_v4  ;;  %3093 = vmatprep.subr.bf16.mxu1 %v3359_v4 }
  0x45   : >> { %3078 = vmatmul.mubr.msk.bf16.vlgmr.msra.gmra.mxu0 %vm333_vm3, %v2814_v52  ;;  %3084 = vmatmul.mubr.msk.bf16.vlgmr.msra.gmra.mxu1 %vm333_vm3, %v2819_v54 }
  0x46   : >> { %3088 = vmatpush3.bf16.msra.mxu0 %v911_v55  ;;  %3094 = vmatpush3.bf16.msra.mxu1 %v974_v56 }
  0x47   : >> { %3089 = vmatprep.mubr.msk.bf16.mxu0 %vm3360_vm4, %v3359_v4  ;;  %3095 = vmatprep.mubr.msk.bf16.mxu1 %vm3360_vm4, %v3359_v4 }
  0x48   : >> { %3099 = vmatprep.subr.bf16.mxu0 %v3359_v4  ;;  %3105 = vmatprep.subr.bf16.mxu1 %v3359_v4 }
  0x4d   : >> { %3090 = vmatmul.mubr.msk.bf16.vlgmr.msra.gmra.mxu0 %vm333_vm3, %v906_v62  ;;  %3096 = vmatmul.mubr.msk.bf16.vlgmr.msra.gmra.mxu1 %vm333_vm3, %v969_v1 }
  0x4e   : >> { %3100 = vmatpush3.bf16.msra.mxu0 %v1028_v2  ;;  %3106 = vmatpush3.bf16.msra.mxu1 %v1080_v3 }
  0x4f   : >> { %3101 = vmatprep.mubr.msk.bf16.mxu0 %vm3360_vm4, %v3359_v4  ;;  %3107 = vmatprep.mubr.msk.bf16.mxu1 %vm3360_vm4, %v3359_v4 }
  0x50   : >> { %3111 = vmatprep.subr.bf16.mxu0 %v3359_v4  ;;  %3117 = vmatprep.subr.bf16.mxu1 %v3359_v4 }
  0x55   : >> { %3102 = vmatmul.mubr.msk.bf16.vlgmr.msra.gmra.mxu0 %vm333_vm3, %v2834_v10  ;;  %3108 = vmatmul.mubr.msk.bf16.vlgmr.msra.gmra.mxu1 %vm333_vm3, %v2839_v12 }
  0x56   : >> { %3112 = vmatpush3.bf16.msra.mxu0 %v1143_v13  ;;  %3118 = vmatpush3.bf16.msra.mxu1 %v1206_v14 }
  0x57   : >> { %3113 = vmatprep.mubr.msk.bf16.mxu0 %vm3360_vm4, %v3359_v4  ;;  %3119 = vmatprep.mubr.msk.bf16.mxu1 %vm3360_vm4, %v3359_v4 }
  0x5d   : >> { %3114 = vmatmul.mubr.msk.bf16.vlgmr.msra.gmra.mxu0 %vm333_vm3, %v1138_v19  ;;  %3120 = vmatmul.mubr.msk.bf16.vlgmr.msra.gmra.mxu1 %vm333_vm3, %v1201_v20 }
  0xe5   : >> { %v375_v21 = vpop.f32.mrf.mxu0  ;;  %v421_v22 = vpop.f32.mrf.mxu1 }
  0xe6   : >> { %v422_v39 = vadd.f32 %v421_v22, %v375_v21 }
  0xe7   : >> { %v3031_v23 = vpop.f32.mrf.mxu0  ;;  %v3037_v24 = vpop.f32.mrf.mxu1 }
  0xe9   : >> { %v378_v25 = vpop.f32.mrf.mxu0  ;;  %v424_v26 = vpop.f32.mrf.mxu1 }
  0xeb   : >> { %v3032_v27 = vpop.f32.mrf.mxu0  ;;  %v3038_v28 = vpop.f32.mrf.mxu1 }
  0xed   : >> { %v483_v29 = vpop.f32.mrf.mxu0  ;;  %v546_v30 = vpop.f32.mrf.mxu1 }
  0xee   : >> { %v489_v42 = vadd.f32 %v483_v29, %v422_v39 }
  0xef   : >> { %v3043_v31 = vpop.f32.mrf.mxu0  ;;  %v3049_v32 = vpop.f32.mrf.mxu1 }
  0xf0   : >> { %v552_v47 = vadd.f32 %v546_v30, %v489_v42 }
  0xf1   : >> { %v486_v33 = vpop.f32.mrf.mxu0  ;;  %v549_v4 = vpop.f32.mrf.mxu1 }
  0xf3   : >> { %v3044_v34 = vpop.f32.mrf.mxu0  ;;  %v3050_v35 = vpop.f32.mrf.mxu1 }
  0xf5   : >> { %v600_v36 = vpop.f32.mrf.mxu0  ;;  %v652_v37 = vpop.f32.mrf.mxu1 }
  0xf6   : >> { %v606_v50 = vadd.f32 %v600_v36, %v552_v47 }
  0xf7   : >> { %v3055_v38 = vpop.f32.mrf.mxu0  ;;  %v3061_v40 = vpop.f32.mrf.mxu1 }
  0xf8   : >> { %v658_v55 = vadd.f32 %v652_v37, %v606_v50  ;;  %v2858_v50 = vld [vmem:[%s2693_s11 + $0xc] sm:$0x1] }
  0xf9   : >> { %v603_v41 = vpop.f32.mrf.mxu0  ;;  %v655_v43 = vpop.f32.mrf.mxu1 }
  0xfb   : >> { %v3056_v44 = vpop.f32.mrf.mxu0  ;;  %v3062_v45 = vpop.f32.mrf.mxu1 }
  0xfd   : >> { %v715_v46 = vpop.f32.mrf.mxu0  ;;  %v778_v48 = vpop.f32.mrf.mxu1 }
  0xfe   : >> { %v721_v58 = vadd.f32 %v715_v46, %v658_v55  ;;  %v3659_v55 = vld [vmem:[%s3943_s5 + $0x1] ss:$0 sm:$0xff] (%p318_p4) }
  0xff   : >> { %v3067_v49 = vpop.f32.mrf.mxu0  ;;  %v3073_v51 = vpop.f32.mrf.mxu1 }
 0x100   : >> { %v784_v63 = vadd.f32 %v778_v48, %v721_v58  ;;  %v2856_v48 = vld [vmem:[%s2693_s11 + $0x8] sm:$0xf] }
 0x101   : >> { %v718_v52 = vpop.f32.mrf.mxu0  ;;  %v781_v53 = vpop.f32.mrf.mxu1 }
 0x103   : >> { %v3068_v54 = vpop.f32.mrf.mxu0  ;;  %v3074_v56 = vpop.f32.mrf.mxu1 }
 0x105   : >> { %v832_v57 = vpop.f32.mrf.mxu0  ;;  %v884_v59 = vpop.f32.mrf.mxu1 }
 0x106   : >> { %v838_v3 = vadd.f32 %v832_v57, %v784_v63 }
 0x107   : >> { %v3079_v60 = vpop.f32.mrf.mxu0  ;;  %v3085_v61 = vpop.f32.mrf.mxu1 }
 0x108   : >> { %v890_v9 = vadd.f32 %v884_v59, %v838_v3 }
 0x109   : >> { %v835_v62 = vpop.f32.mrf.mxu0  ;;  %v887_v1 = vpop.f32.mrf.mxu1 }
 0x10b   : >> { %v3080_v2 = vpop.f32.mrf.mxu0  ;;  %v3086_v5 = vpop.f32.mrf.mxu1 }
 0x10d   : >> { %v947_v6 = vpop.f32.mrf.mxu0  ;;  %v1010_v7 = vpop.f32.mrf.mxu1 }
 0x10e   : >> { %v953_v12 = vadd.f32 %v947_v6, %v890_v9 }
 0x10f   : >> { %v3091_v8 = vpop.f32.mrf.mxu0  ;;  %v3097_v10 = vpop.f32.mrf.mxu1 }
 0x110   : >> { %v1016_v17 = vadd.f32 %v1010_v7, %v953_v12 }
 0x111   : >> { %v950_v11 = vpop.f32.mrf.mxu0  ;;  %v1013_v13 = vpop.f32.mrf.mxu1 }
 0x113   : >> { %v3092_v14 = vpop.f32.mrf.mxu0  ;;  %v3098_v15 = vpop.f32.mrf.mxu1 }
 0x115   : >> { %v1064_v16 = vpop.f32.mrf.mxu0  ;;  %v1116_v18 = vpop.f32.mrf.mxu1 }
 0x116   : >> { %v1070_v20 = vadd.f32 %v1064_v16, %v1016_v17 }
 0x117   : >> { %v3103_v19 = vpop.f32.mrf.mxu0  ;;  %v3109_v21 = vpop.f32.mrf.mxu1 }
 0x118   : >> { %v1122_v25 = vadd.f32 %v1116_v18, %v1070_v20 }
 0x119   : >> { %v1067_v22 = vpop.f32.mrf.mxu0  ;;  %v1119_v23 = vpop.f32.mrf.mxu1 }
 0x11b   : >> { %v3104_v24 = vpop.f32.mrf.mxu0  ;;  %v3110_v26 = vpop.f32.mrf.mxu1 }
 0x11d   : >> { %v1179_v27 = vpop.f32.mrf.mxu0  ;;  %v1242_v29 = vpop.f32.mrf.mxu1 }
 0x11e   : >> { %v1185_v28 = vadd.f32 %v1179_v27, %v1122_v25 }
 0x11f   : >> { %v3115_v30 = vpop.f32.mrf.mxu0  ;;  %v3121_v32 = vpop.f32.mrf.mxu1 }
 0x120   : >> { %v1248_v31 = vadd.f32 %v1242_v29, %v1185_v28 }
 0x121   : >> { %v1182_v33 = vpop.f32.mrf.mxu0  ;;  %v1245_v34 = vpop.f32.mrf.mxu1 }
 0x122   : >> { %v1253_v4 = vadd.f32 %v3420_v0, %v1248_v31 }
 0x123   : >> { %v3116_v35 = vpop.f32.mrf.mxu0  ;;  %v3122_v37 = vpop.f32.mrf.mxu1 }
 0x124   : >> { %v2853_v36 = vmul.f32 -1.442695, %v1253_v4 }
 0x126   : >> { %3290 = vpow2.f32 %v2853_v36 }
 0x133   : >> { %v3291_v38 = vpop.eup %3290 }
 0x134   : >> { %v1257_v39 = vadd.f32 1.0, %v3291_v38 }
 0x136   : >> { %3292 = vrcp.f32 %v1257_v39 }
 0x143   : >> { %v3293_v40 = vpop.eup %3292 }
 0x144   : >> { %1261 = vrot.lane.b32.xlu0 %v3293_v40, %s3361_s24 }
 0x1b6   : >> { %v1262_v41 = vpop.permute.xlu0 %1261 }
 0x1b7   : >> { %v1264_v42 = vmul.f32 %v1262_v41, %v1253_v4 }
 0x1b9   : >> { %v2955_v43 = vpack.c.bf16 %v1264_v42, %v1264_v42 }
 0x1bb   : >> { %v1271_v44 = vshrl.u32 %v2955_v43, 16  ;;  %v1274_v46 = vshll.u32 %v2955_v43, 16 }
 0x1bd   : >> { %v1273_v45 = vrot.slane %v1271_v44, 7 }
 0x1be   : > { %320 = sbr.rel (!%p318_p4) target bundleno = 32 (0x20), region = 155 }
 0x1bf   : >> { %v1276_v51 = vor.u32 %v1274_v46, %v1273_v45  ;;  %v1277_v52 = vrot.slane %v1273_v45, 4 }
 0x1c1   : >> { %v1287_v53 = vsel %vm3640_vm7, %v1276_v51, %v2856_v48  ;;  %v1293_v54 = vsel %vm3645_vm8, %v1277_v52, %v2858_v50 }
 0x1c2   : >> { %2857 = vst [vmem:[%s2693_s11 + $0x8] sm:$0xf] %v1287_v53  ;;  %2859 = vst [vmem:[%s2693_s11 + $0xc] sm:$0x1] %v1293_v54 }
 0x1c3 LB: >> { %v2862_v56 = vld [vmem:[%s3941_s3 + $0x4] sm:$0xf]  ;;  %v1306_v0 = vld [vmem:[%s3941_s3] sm:$0xf]  ;;  %v3362_v57 = vmov 0.0   ;;  %s2956_s20 = sshll.u32 %s3348_s16, 3  ;;  %s3348_s16 = sphi %s3661_s16, %s1301_s16  }
 0x1c4   : >> { %3123 = vmatprep.subr.bf16.mxu0 %v3362_v57  ;;  %v1328_v58 = vsel %vm337_vm2, %v2862_v56, 0  ;;  %3129 = vmatprep.subr.bf16.mxu1 %v3362_v57  ;;  %v1374_v59 = vsel %vm337_vm2, %v1306_v0, 0  ;;  %v2871_v60 = vld [vmem:[%s3941_s3 + $0xc] sm:$0xf]  ;;  %vm3363_vm9 = vmmov 0   ;;  %s3688_s22 = scalar_lea.vmem [#allocation2], %s2956_s20 }
 0x1c5   : >> { %3124 = vmatpush3.bf16.msra.mxu0 %v1328_v58  ;;  %3130 = vmatpush3.bf16.msra.mxu1 %v1374_v59  ;;  %v1481_v61 = vsel %vm337_vm2, %v2871_v60, 0  ;;  %v2866_v5 = vld [vmem:[%s3941_s3 + $0x8] sm:$0xf]  ;;  %v2879_v8 = vld [vmem:[%s3941_s3 + $0x14] sm:$0xf]  ;;  %s3364_s15 = smov 64  }
 0x1c6   : >> { %3125 = vmatprep.mubr.msk.bf16.mxu0 %vm3363_vm9, %v3362_v57  ;;  %3131 = vmatprep.mubr.msk.bf16.mxu1 %vm3363_vm9, %v3362_v57  ;;  %v1427_v16 = vsel %vm337_vm2, %v2866_v5, 0  ;;  %v1598_v18 = vsel %vm337_vm2, %v2879_v8, 0  ;;  %v2875_v22 = vld [vmem:[%s3941_s3 + $0x10] sm:$0xf]  ;;  %v2888_v26 = vld [vmem:[%s3941_s3 + $0x1c] sm:$0xf] }
 0x1c7   : >> { %3135 = vmatprep.subr.bf16.mxu0 %v3362_v57  ;;  %3141 = vmatprep.subr.bf16.mxu1 %v3362_v57  ;;  %v1544_v28 = vsel %vm337_vm2, %v2875_v22, 0  ;;  %v1715_v29 = vsel %vm337_vm2, %v2888_v26, 0  ;;  %v2884_v4 = vld [vmem:[%s3941_s3 + $0x18] sm:$0xf]  ;;  %v2892_v37 = vld [vmem:[%s3941_s3 + $0x20] sm:$0xf] }
 0x1c8   : >> { %v1652_v36 = vsel %vm337_vm2, %v2884_v4, 0  ;;  %v1769_v40 = vsel %vm337_vm2, %v2892_v37, 0  ;;  %s1829_s17 = scalar_lea.vmem [#allocation4], %s2956_s20  ;;  %s1301_s16 = sadd.s32 1, %s3348_s16  }
 0x1c9   : >> { %v1305_v62 = vld [vmem:[%s3688_s22] sm:$0xf]  ;;  %v1307_v63 = vld [vmem:[%s3688_s22 + $0x4] sm:$0x1]  ;;  %v2870_v7 = vld [vmem:[%s3688_s22 + $0x8] sm:$0xf] }
 0x1ca   : >> { %v2863_v1 = vcombine.low %v1305_v62, %v1307_v63  ;;  %3132 = vmatmul.mubr.msk.bf16.vlgmr.msra.gmra.mxu1 %vm333_vm3, %v1305_v62  ;;  %v1416_v6 = vld [vmem:[%s3688_s22] sm:$0xe]  ;;  %v2873_v10 = vld [vmem:[%s3688_s22 + $0x8] sm:$0xf]  ;;  %v2874_v11 = vld [vmem:[%s3688_s22 + $0xc] sm:$0x1] }
 0x1cb   : >> { %3142 = vmatpush3.bf16.msra.mxu1 %v1481_v61  ;;  %3143 = vmatprep.mubr.msk.bf16.mxu1 %vm3363_vm9, %v3362_v57  ;;  %v2878_v12 = vld [vmem:[%s3688_s22 + $0x8] sm:$0xe]  ;;  %v2886_v13 = vld [vmem:[%s3688_s22 + $0x10] sm:$0xf]  ;;  %v2887_v14 = vld [vmem:[%s3688_s22 + $0x14] sm:$0x1]  ;;  %v2867_v17 = vcombine.low %v1416_v6, %v1307_v63  ;;  %v2876_v19 = vcombine.low %v2873_v10, %v2874_v11 }
 0x1cc   : >> { %v1316_v2 = vshrl.u32 %v2863_v1, 16  ;;  %v1318_v3 = vshll.u32 %v2863_v1, 16  ;;  %3153 = vmatprep.subr.bf16.mxu1 %v3362_v57  ;;  %v2880_v20 = vcombine.low %v2878_v12, %v2874_v11  ;;  %v2889_v21 = vcombine.low %v2886_v13, %v2887_v14  ;;  %v2883_v38 = vld [vmem:[%s3688_s22 + $0x10] sm:$0xf]  ;;  %p1298_p5 = scmp.ge.s32.totalorder %s1301_s16, 8  }
 0x1cd   : >> { %v1422_v23 = vrot.slane %v2867_v17, 1  ;;  %v1536_v24 = vshll.u32 %v2876_v19, 16  ;;  %v1534_v30 = vshrl.u32 %v2876_v19, 16  ;;  %v2891_v39 = vld [vmem:[%s3688_s22 + $0x10] sm:$0xe]  ;;  %s3350_s16 = smov (%p1298_p5), 0  }
 0x1ce   : >> { %v1320_v9 = vrot.slane %v1318_v3, 1  ;;  %v1593_v25 = vrot.slane %v2880_v20, 1  ;;  %v1707_v27 = vshll.u32 %v2889_v21, 16  ;;  %v1705_v32 = vshrl.u32 %v2889_v21, 16 }
 0x1cf   : >> { %v1538_v31 = vrot.slane %v1536_v24, 1  ;;  %v2893_v41 = vcombine.low %v2891_v39, %v2887_v14 }
 0x1d0   : >> { %v1321_v15 = vor.u32 %v1320_v9, %v1316_v2  ;;  %v1709_v33 = vrot.slane %v1707_v27, 1 }
 0x1d1   : >> { %v1539_v34 = vor.u32 %v1538_v31, %v1534_v30  ;;  %v1764_v42 = vrot.slane %v2893_v41, 1 }
 0x1d2   : >> { %3126 = vmatmul.mubr.msk.bf16.vlgmr.msra.gmra.mxu0 %vm333_vm3, %v1321_v15  ;;  %3144 = vmatmul.mubr.msk.bf16.vlgmr.msra.gmra.mxu1 %vm333_vm3, %v2870_v7  ;;  %v1710_v35 = vor.u32 %v1709_v33, %v1705_v32 }
 0x1d3   : >> { %3136 = vmatpush3.bf16.msra.mxu0 %v1427_v16  ;;  %3137 = vmatprep.mubr.msk.bf16.mxu0 %vm3363_vm9, %v3362_v57 }
 0x1d4   : >> { %3147 = vmatprep.subr.bf16.mxu0 %v3362_v57  ;;  %3154 = vmatpush3.bf16.msra.mxu1 %v1598_v18 }
 0x1d5   : >> { %3155 = vmatprep.mubr.msk.bf16.mxu1 %vm3363_vm9, %v3362_v57  ;;  %3165 = vmatprep.subr.bf16.mxu1 %v3362_v57 }
 0x1da   : >> { %3138 = vmatmul.mubr.msk.bf16.vlgmr.msra.gmra.mxu0 %vm333_vm3, %v1422_v23  ;;  %3156 = vmatmul.mubr.msk.bf16.vlgmr.msra.gmra.mxu1 %vm333_vm3, %v1593_v25 }
 0x1db   : >> { %3148 = vmatpush3.bf16.msra.mxu0 %v1544_v28  ;;  %3149 = vmatprep.mubr.msk.bf16.mxu0 %vm3363_vm9, %v3362_v57 }
 0x1dc   : >> { %3159 = vmatprep.subr.bf16.mxu0 %v3362_v57  ;;  %3166 = vmatpush3.bf16.msra.mxu1 %v1715_v29 }
 0x1dd   : >> { %3167 = vmatprep.mubr.msk.bf16.mxu1 %vm3363_vm9, %v3362_v57 }
 0x1e2   : >> { %3150 = vmatmul.mubr.msk.bf16.vlgmr.msra.gmra.mxu0 %vm333_vm3, %v1539_v34  ;;  %3168 = vmatmul.mubr.msk.bf16.vlgmr.msra.gmra.mxu1 %vm333_vm3, %v1710_v35 }
 0x1e3   : >> { %3160 = vmatpush3.bf16.msra.mxu0 %v1652_v36  ;;  %3161 = vmatprep.mubr.msk.bf16.mxu0 %vm3363_vm9, %v3362_v57 }
 0x1e4   : >> { %3171 = vmatprep.subr.bf16.mxu0 %v3362_v57 }
 0x1ea   : >> { %3162 = vmatmul.mubr.msk.bf16.vlgmr.msra.gmra.mxu0 %vm333_vm3, %v2883_v38 }
 0x1eb   : >> { %3172 = vmatpush3.bf16.msra.mxu0 %v1769_v40  ;;  %3173 = vmatprep.mubr.msk.bf16.mxu0 %vm3363_vm9, %v3362_v57 }
 0x1f2   : >> { %3174 = vmatmul.mubr.msk.bf16.vlgmr.msra.gmra.mxu0 %vm333_vm3, %v1764_v42 }
 0x28a   : >> { %v1410_v43 = vpop.f32.mrf.mxu1 }
 0x28c   : >> { %v3133_v44 = vpop.f32.mrf.mxu1 }
 0x28e   : >> { %v1413_v45 = vpop.f32.mrf.mxu1 }
 0x290   : >> { %v3134_v46 = vpop.f32.mrf.mxu1 }
 0x292   : >> { %v1364_v48 = vpop.f32.mrf.mxu0  ;;  %v1517_v50 = vpop.f32.mrf.mxu1 }
 0x293   : >> { %v1411_v63 = vadd.f32 %v1410_v43, %v1364_v48 }
 0x294   : >> { %v3127_v51 = vpop.f32.mrf.mxu0  ;;  %v3145_v52 = vpop.f32.mrf.mxu1 }
 0x296   : >> { %v1367_v53 = vpop.f32.mrf.mxu0  ;;  %v1520_v54 = vpop.f32.mrf.mxu1 }
 0x298   : >> { %v3128_v56 = vpop.f32.mrf.mxu0  ;;  %v3146_v0 = vpop.f32.mrf.mxu1 }
 0x29a   : >> { %v1463_v58 = vpop.f32.mrf.mxu0  ;;  %v1634_v59 = vpop.f32.mrf.mxu1 }
 0x29b   : >> { %v1469_v3 = vadd.f32 %v1463_v58, %v1411_v63 }
 0x29c   : >> { %v3139_v60 = vpop.f32.mrf.mxu0  ;;  %v3157_v61 = vpop.f32.mrf.mxu1 }
 0x29d   : >> { %v1523_v9 = vadd.f32 %v1517_v50, %v1469_v3 }
 0x29e   : >> { %v1466_v57 = vpop.f32.mrf.mxu0  ;;  %v1637_v62 = vpop.f32.mrf.mxu1 }
 0x2a0   : >> { %v3140_v1 = vpop.f32.mrf.mxu0  ;;  %v3158_v2 = vpop.f32.mrf.mxu1 }
 0x2a2   : >> { %v1580_v5 = vpop.f32.mrf.mxu0  ;;  %v1751_v6 = vpop.f32.mrf.mxu1 }
 0x2a3   : >> { %v1586_v12 = vadd.f32 %v1580_v5, %v1523_v9 }
 0x2a4   : >> { %v3151_v7 = vpop.f32.mrf.mxu0  ;;  %v3169_v8 = vpop.f32.mrf.mxu1 }
 0x2a5   : >> { %v1640_v16 = vadd.f32 %v1634_v59, %v1586_v12 }
 0x2a6   : >> { %v1583_v10 = vpop.f32.mrf.mxu0  ;;  %v1754_v11 = vpop.f32.mrf.mxu1 }
 0x2a8   : >> { %v3152_v13 = vpop.f32.mrf.mxu0  ;;  %v3170_v14 = vpop.f32.mrf.mxu1 }
 0x2aa   : >> { %v1688_v15 = vpop.f32.mrf.mxu0 }
 0x2ab   : >> { %v1694_v18 = vadd.f32 %v1688_v15, %v1640_v16 }
 0x2ac   : >> { %v3163_v17 = vpop.f32.mrf.mxu0 }
 0x2ad   : >> { %v1757_v21 = vadd.f32 %v1751_v6, %v1694_v18 }
 0x2ae   : >> { %v1691_v19 = vpop.f32.mrf.mxu0 }
 0x2b0   : >> { %v3164_v20 = vpop.f32.mrf.mxu0 }
 0x2b2   : >> { %v1805_v22 = vpop.f32.mrf.mxu0 }
 0x2b3   : >> { %v1811_v23 = vadd.f32 %v1805_v22, %v1757_v21 }
 0x2b4   : >> { %v3175_v24 = vpop.f32.mrf.mxu0 }
 0x2b5   : >> { %v1816_v25 = vadd.f32 %v3659_v55, %v1811_v23 }
 0x2b6   : >> { %v1808_v26 = vpop.f32.mrf.mxu0 }
 0x2b7   : >> { %v2896_v27 = vmul.f32 -1.442695, %v1816_v25 }
 0x2b8   : >> { %v3176_v28 = vpop.f32.mrf.mxu0 }
 0x2b9   : >> { %3300 = vpow2.f32 %v2896_v27 }
 0x2c6   : >> { %v3301_v29 = vpop.eup %3300 }
 0x2c7   : >> { %v1820_v30 = vadd.f32 1.0, %v3301_v29 }
 0x2c9   : >> { %3302 = vrcp.f32 %v1820_v30 }
 0x2d6   : >> { %v3303_v31 = vpop.eup %3302 }
 0x2d7   : >> { %1824 = vrot.lane.b32.xlu0 %v3303_v31, %s3364_s15 }
 0x348   : > { %1300 = sbr.rel (!%p1298_p5) target bundleno = 451 (0x1c3), region = 166 }
 0x349   : >> { %v1825_v32 = vpop.permute.xlu0 %1824 }
 0x34a   : >> { %v1827_v33 = vmul.f32 %v1825_v32, %v1816_v25 }
 0x34c   : >> { %1830 = vst.msk [vmem:[%s1829_s17] sm:$0xff] %vm333_vm3, %v1827_v33 }
 0x353   : > { %v1831_v4 = vld [vmem:[#allocation4] sm:$0xff]  ;;  %v1832_v34 = vld [vmem:[#allocation4 + $0x8] sm:$0xff]  ;;  %v1833_v35 = vld [vmem:[#allocation4 + $0x10] sm:$0xff] }
 0x354   : > { %v1834_v36 = vld [vmem:[#allocation4 + $0x18] sm:$0xff]  ;;  %v1840_v37 = vsel %vm333_vm3, %v1831_v4, 0.0  ;;  %v1841_v38 = vsel %vm333_vm3, %v1832_v34, 0.0  ;;  %v1843_v39 = vsel %vm333_vm3, %v1833_v35, 0.0  ;;  %v1835_v40 = vld [vmem:[#allocation4 + $0x20] sm:$0xff]  ;;  %v1836_v43 = vld [vmem:[#allocation4 + $0x28] sm:$0xff] }
 0x355   : > { %v1842_v41 = vadd.f32 %v1841_v38, %v1840_v37  ;;  %v1845_v42 = vsel %vm333_vm3, %v1834_v36, 0.0  ;;  %v1847_v45 = vsel %vm333_vm3, %v1835_v40, 0.0  ;;  %v1837_v46 = vld [vmem:[#allocation4 + $0x30] sm:$0xff]  ;;  %v1849_v55 = vsel %vm333_vm3, %v1836_v43, 0.0  ;;  %v1838_v50 = vld [vmem:[#allocation4 + $0x38] sm:$0xff] }
 0x356   : > { %v1851_v52 = vsel %vm333_vm3, %v1837_v46, 0.0  ;;  %v1853_v54 = vsel %vm333_vm3, %v1838_v50, 0.0 }
 0x357   : > { %v1844_v44 = vadd.f32 %v1843_v39, %v1842_v41 }
 0x359   : > { %v1846_v48 = vadd.f32 %v1845_v42, %v1844_v44 }
 0x35b   : > { %v1848_v51 = vadd.f32 %v1847_v45, %v1846_v48 }
 0x35d   : > { %v1850_v53 = vadd.f32 %v1849_v55, %v1848_v51 }
 0x35f   : > { %v1852_v56 = vadd.f32 %v1851_v52, %v1850_v53 }
 0x361   : > { %v1854_v0 = vadd.f32 %v1853_v54, %v1852_v56 }
 0x363   : > { %v1855_v58 = vrot.slane %v1854_v0, 4 }
 0x365   : > { %v1856_v59 = vadd.f32 %v1855_v58, %v1854_v0 }
 0x367   : > { %v1857_v60 = vrot.slane %v1856_v59, 2 }
 0x369   : > { %v1858_v61 = vadd.f32 %v1857_v60, %v1856_v59 }
 0x36b   : > { %v1859_v57 = vrot.slane %v1858_v61, 1 }
 0x36d   : > { %v1860_v62 = vadd.f32 %v1859_v57, %v1858_v61 }
 0x36f   : > { %v1862_v63 = vmul.f32 0.015625, %v1860_v62 }
 0x371   : > { %v1863_v1 = vsub.f32 %v1831_v4, %v1862_v63  ;;  %v1864_v2 = vsub.f32 %v1832_v34, %v1862_v63  ;;  %v1865_v3 = vsub.f32 %v1833_v35, %v1862_v63  ;;  %v1866_v5 = vsub.f32 %v1834_v36, %v1862_v63 }
 0x372   : > { %v1867_v6 = vsub.f32 %v1835_v40, %v1862_v63  ;;  %v1868_v7 = vsub.f32 %v1836_v43, %v1862_v63  ;;  %v1869_v12 = vsub.f32 %v1837_v46, %v1862_v63  ;;  %v1870_v18 = vsub.f32 %v1838_v50, %v1862_v63 }
 0x373   : > { %v1871_v8 = vmul.f32 %v1863_v1, %v1863_v1  ;;  %v1872_v9 = vmul.f32 %v1864_v2, %v1864_v2  ;;  %v1873_v10 = vmul.f32 %v1865_v3, %v1865_v3  ;;  %v1874_v11 = vmul.f32 %v1866_v5, %v1866_v5 }
 0x374   : > { %v1875_v13 = vmul.f32 %v1867_v6, %v1867_v6  ;;  %v1876_v19 = vmul.f32 %v1868_v7, %v1868_v7  ;;  %v1877_v22 = vmul.f32 %v1869_v12, %v1869_v12  ;;  %v1878_v25 = vmul.f32 %v1870_v18, %v1870_v18 }
 0x375   : > { %v1879_v14 = vsel %vm333_vm3, %v1871_v8, 0.0  ;;  %v1880_v15 = vsel %vm333_vm3, %v1872_v9, 0.0  ;;  %v1882_v16 = vsel %vm333_vm3, %v1873_v10, 0.0  ;;  %v1884_v20 = vsel %vm333_vm3, %v1874_v11, 0.0 }
 0x376   : > { %v1881_v17 = vadd.f32 %v1880_v15, %v1879_v14  ;;  %v1886_v23 = vsel %vm333_vm3, %v1875_v13, 0.0  ;;  %v1888_v26 = vsel %vm333_vm3, %v1876_v19, 0.0  ;;  %v1890_v28 = vsel %vm333_vm3, %v1877_v22, 0.0 }
 0x377   : > { %v1892_v30 = vsel %vm333_vm3, %v1878_v25, 0.0 }
 0x378   : > { %v1883_v21 = vadd.f32 %v1882_v16, %v1881_v17 }
 0x37a   : > { %v1885_v24 = vadd.f32 %v1884_v20, %v1883_v21 }
 0x37c   : > { %v1887_v27 = vadd.f32 %v1886_v23, %v1885_v24 }
 0x37e   : > { %v1889_v29 = vadd.f32 %v1888_v26, %v1887_v27 }
 0x380   : > { %v1891_v31 = vadd.f32 %v1890_v28, %v1889_v29 }
 0x382   : > { %v1893_v32 = vadd.f32 %v1892_v30, %v1891_v31 }
 0x384   : > { %v1894_v33 = vrot.slane %v1893_v32, 4 }
 0x386   : > { %v1895_v4 = vadd.f32 %v1894_v33, %v1893_v32 }
 0x388   : > { %v1896_v34 = vrot.slane %v1895_v4, 2 }
 0x38a   : > { %v1897_v35 = vadd.f32 %v1896_v34, %v1895_v4 }
 0x38c   : > { %v1898_v36 = vrot.slane %v1897_v35, 1 }
 0x38e   : > { %v1899_v37 = vadd.f32 %v1898_v36, %v1897_v35 }
 0x390   : > { %v1900_v38 = vmul.f32 0.015625, %v1899_v37 }
 0x392   : > { %v1901_v39 = vadd.f32 1e-05, %v1900_v38 }
 0x394   : > { %3304 = vrsqrt.f32 %v1901_v39 }
 0x3a1   : > { %v3305_v40 = vpop.eup %3304 }
 0x3a2   : > { %v1903_v41 = vmul.f32 %v3305_v40, %v1863_v1  ;;  %v1904_v42 = vmul.f32 %v3305_v40, %v1864_v2  ;;  %v1905_v43 = vmul.f32 %v3305_v40, %v1865_v3  ;;  %v1906_v44 = vmul.f32 %v3305_v40, %v1866_v5 }
 0x3a3   : > { %v1907_v45 = vmul.f32 %v3305_v40, %v1867_v6  ;;  %v1908_v46 = vmul.f32 %v3305_v40, %v1868_v7  ;;  %v1909_v48 = vmul.f32 %v3305_v40, %v1869_v12  ;;  %v1910_v55 = vmul.f32 %v3305_v40, %v1870_v18 }
 0x3a4   : > { %vm1911_vm10 = vcmp.ge.f32.partialorder %v1903_v41, 0.0  ;;  %v1919_v50 = vmul.f32 0.1, %v1903_v41  ;;  %vm1912_vm11 = vcmp.ge.f32.partialorder %v1904_v42, 0.0  ;;  %v1920_v51 = vmul.f32 0.1, %v1904_v42 }
 0x3a5   : > { %vm1913_vm12 = vcmp.ge.f32.partialorder %v1905_v43, 0.0  ;;  %v1921_v52 = vmul.f32 0.1, %v1905_v43  ;;  %vm1914_vm13 = vcmp.ge.f32.partialorder %v1906_v44, 0.0  ;;  %v1922_v53 = vmul.f32 0.1, %v1906_v44 }
 0x3a6   : > { %v1927_v54 = vsel %vm1911_vm10, %v1903_v41, %v1919_v50  ;;  %v1928_v56 = vsel %vm1912_vm11, %v1904_v42, %v1920_v51  ;;  %vm1915_vm14 = vcmp.ge.f32.partialorder %v1907_v45, 0.0  ;;  %v1923_v0 = vmul.f32 0.1, %v1907_v45 }
 0x3a7   : > { %1935 = vst.msk [vmem:[#allocation4] sm:$0xff] %vm333_vm3, %v1927_v54  ;;  %1936 = vst.msk [vmem:[#allocation4 + $0x8] sm:$0xff] %vm333_vm3, %v1928_v56  ;;  %v1929_v58 = vsel %vm1913_vm12, %v1905_v43, %v1921_v52  ;;  %v1930_v59 = vsel %vm1914_vm13, %v1906_v44, %v1922_v53  ;;  %vm1916_vm15 = vcmp.ge.f32.partialorder %v1908_v46, 0.0  ;;  %v1924_v60 = vmul.f32 0.1, %v1908_v46 }
 0x3a8   : > { %1937 = vst.msk [vmem:[#allocation4 + $0x10] sm:$0xff] %vm333_vm3, %v1929_v58  ;;  %1938 = vst.msk [vmem:[#allocation4 + $0x18] sm:$0xff] %vm333_vm3, %v1930_v59  ;;  %v1931_v61 = vsel %vm1915_vm14, %v1907_v45, %v1923_v0  ;;  %vm1917_vm0 = vcmp.ge.f32.partialorder %v1909_v48, 0.0  ;;  %v1925_v57 = vmul.f32 0.1, %v1909_v48  ;;  %vm1918_vm1 = vcmp.ge.f32.partialorder %v1910_v55, 0.0 }
 0x3a9   : > { %1939 = vst.msk [vmem:[#allocation4 + $0x20] sm:$0xff] %vm333_vm3, %v1931_v61  ;;  %v1932_v62 = vsel %vm1916_vm15, %v1908_v46, %v1924_v60  ;;  %v1926_v63 = vmul.f32 0.1, %v1910_v55 }
 0x3aa   : > { %1940 = vst.msk [vmem:[#allocation4 + $0x28] sm:$0xff] %vm333_vm3, %v1932_v62  ;;  %v1933_v1 = vsel %vm1917_vm0, %v1909_v48, %v1925_v57 }
 0x3ab   : > { %1941 = vst.msk [vmem:[#allocation4 + $0x30] sm:$0xff] %vm333_vm3, %v1933_v1  ;;  %v1934_v2 = vsel %vm1918_vm1, %v1910_v55, %v1926_v63 }
 0x3ac   : > { %1942 = vst.msk [vmem:[#allocation4 + $0x38] sm:$0xff] %vm333_vm3, %v1934_v2 }
 0x3ad LB: >> { %s2898_s18 = sshll.u32 %s3352_s16, 3  ;;  %s1948_s16 = sadd.s32 1, %s3352_s16   ;;  %s3352_s16 = sphi %s3350_s16, %s1948_s16  }
 0x3ae   : >> { %s1950_s19 = scalar_lea.vmem [#allocation4], %s2898_s18  ;;  %s2708_s13 = scalar_lea.vmem [#allocation3], %s2898_s18 }
 0x3af   : >> { %v2901_v9 = vld [vmem:[%s2708_s13 + $0x8] sm:$0xf]  ;;  %v2903_v10 = vld [vmem:[%s2708_s13 + $0xc] sm:$0x1]  ;;  %p1945_p6 = scmp.ge.s32.totalorder %s1948_s16, 8  }
 0x3b0   : > { %v3792_v15 = vld [vmem:[%s3943_s5 + $0x2] ss:$0 sm:$0xff] (%p1945_p6)  ;;  %s3794_s20 = smov (%p1945_p6), 0  }
 0x3b3   : >> { %v1951_v3 = vld [vmem:[%s1950_s19] sm:$0xff] }
 0x3b4   : >> { %v2957_v5 = vpack.c.bf16 %v1951_v3, %v1951_v3 }
 0x3b6   : >> { %v1958_v6 = vshrl.u32 %v2957_v5, 16  ;;  %v1961_v7 = vshll.u32 %v2957_v5, 16 }
 0x3b8   : >> { %v1960_v8 = vrot.slane %v1958_v6, 7 }
 0x3b9   : > { %1947 = sbr.rel (!%p1945_p6) target bundleno = 941 (0x3ad), region = 177 }
 0x3ba   : >> { %v1963_v11 = vor.u32 %v1961_v7, %v1960_v8  ;;  %v1964_v12 = vrot.slane %v1960_v8, 4 }
 0x3bc   : >> { %v1974_v13 = vsel %vm3640_vm7, %v1963_v11, %v2901_v9  ;;  %v1980_v14 = vsel %vm3645_vm8, %v1964_v12, %v2903_v10 }
 0x3bd   : >> { %2902 = vst [vmem:[%s2708_s13 + $0x8] sm:$0xf] %v1974_v13  ;;  %2904 = vst [vmem:[%s2708_s13 + $0xc] sm:$0x1] %v1980_v14 }
 0x3be LB: >> { %v2907_v16 = vld [vmem:[%s3942_s4 + $0x4] sm:$0xf]  ;;  %v1993_v47 = vld [vmem:[%s3942_s4] sm:$0xf]  ;;  %v3365_v49 = vmov 0.0   ;;  %s2958_s7 = sshll.u32 %s3356_s20, 3  ;;  %s3356_s20 = sphi %s3794_s20, %s1988_s20  }
 0x3bf   : >> { %3177 = vmatprep.subr.bf16.mxu0 %v3365_v49  ;;  %v2014_v17 = vsel %vm337_vm2, %v2907_v16, 0  ;;  %3183 = vmatprep.subr.bf16.mxu1 %v3365_v49  ;;  %v2060_v18 = vsel %vm337_vm2, %v1993_v47, 0  ;;  %v2916_v19 = vld [vmem:[%s3942_s4 + $0xc] sm:$0xf]  ;;  %vm3366_vm4 = vmmov 0   ;;  %s3821_s8 = scalar_lea.vmem [#allocation3], %s2958_s7  ;;  %s2515_s22 = scalar_lea.vmem %s3469_s30, %s2958_s7 }
 0x3c0   : >> { %3178 = vmatpush3.bf16.msra.mxu0 %v2014_v17  ;;  %3184 = vmatpush3.bf16.msra.mxu1 %v2060_v18  ;;  %v2167_v20 = vsel %vm337_vm2, %v2916_v19, 0  ;;  %v2911_v26 = vld [vmem:[%s3942_s4 + $0x8] sm:$0xf]  ;;  %v2924_v29 = vld [vmem:[%s3942_s4 + $0x14] sm:$0xf]  ;;  %s3367_s12 = smov 64  }
 0x3c1   : >> { %3179 = vmatprep.mubr.msk.bf16.mxu0 %vm3366_vm4, %v3365_v49  ;;  %3185 = vmatprep.mubr.msk.bf16.mxu1 %vm3366_vm4, %v3365_v49  ;;  %v2113_v36 = vsel %vm337_vm2, %v2911_v26, 0  ;;  %v2284_v38 = vsel %vm337_vm2, %v2924_v29, 0  ;;  %v2920_v42 = vld [vmem:[%s3942_s4 + $0x10] sm:$0xf]  ;;  %v2933_v46 = vld [vmem:[%s3942_s4 + $0x1c] sm:$0xf] }
 0x3c2   : >> { %3189 = vmatprep.subr.bf16.mxu0 %v3365_v49  ;;  %3195 = vmatprep.subr.bf16.mxu1 %v3365_v49  ;;  %v2230_v55 = vsel %vm337_vm2, %v2920_v42, 0  ;;  %v2401_v50 = vsel %vm337_vm2, %v2933_v46, 0  ;;  %v2929_v56 = vld [vmem:[%s3942_s4 + $0x18] sm:$0xf]  ;;  %v2937_v60 = vld [vmem:[%s3942_s4 + $0x20] sm:$0xf] }
 0x3c3   : >> { %v2338_v59 = vsel %vm337_vm2, %v2929_v56, 0  ;;  %v2455_v62 = vsel %vm337_vm2, %v2937_v60, 0  ;;  %s1988_s20 = sadd.s32 1, %s3356_s20  }
 0x3c4   : >> { %v1992_v21 = vld [vmem:[%s3821_s8] sm:$0xf]  ;;  %v1994_v22 = vld [vmem:[%s3821_s8 + $0x4] sm:$0x1]  ;;  %v2915_v28 = vld [vmem:[%s3821_s8 + $0x8] sm:$0xf] }
 0x3c5   : >> { %v2908_v23 = vcombine.low %v1992_v21, %v1994_v22  ;;  %3186 = vmatmul.mubr.msk.bf16.vlgmr.msra.gmra.mxu1 %vm333_vm3, %v1992_v21  ;;  %v2102_v27 = vld [vmem:[%s3821_s8] sm:$0xe]  ;;  %v2918_v31 = vld [vmem:[%s3821_s8 + $0x8] sm:$0xf]  ;;  %v2919_v32 = vld [vmem:[%s3821_s8 + $0xc] sm:$0x1] }
 0x3c6   : >> { %3196 = vmatpush3.bf16.msra.mxu1 %v2167_v20  ;;  %3197 = vmatprep.mubr.msk.bf16.mxu1 %vm3366_vm4, %v3365_v49  ;;  %v2923_v33 = vld [vmem:[%s3821_s8 + $0x8] sm:$0xe]  ;;  %v2931_v4 = vld [vmem:[%s3821_s8 + $0x10] sm:$0xf]  ;;  %v2932_v34 = vld [vmem:[%s3821_s8 + $0x14] sm:$0x1]  ;;  %v2912_v37 = vcombine.low %v2102_v27, %v1994_v22  ;;  %v2921_v39 = vcombine.low %v2918_v31, %v2919_v32 }
 0x3c7   : >> { %v2003_v24 = vshrl.u32 %v2908_v23, 16  ;;  %v2005_v25 = vshll.u32 %v2908_v23, 16  ;;  %3207 = vmatprep.subr.bf16.mxu1 %v3365_v49  ;;  %v2925_v40 = vcombine.low %v2923_v33, %v2919_v32  ;;  %v2934_v41 = vcombine.low %v2931_v4, %v2932_v34  ;;  %v2928_v61 = vld [vmem:[%s3821_s8 + $0x10] sm:$0xf]  ;;  %p1985_p7 = scmp.ge.s32.totalorder %s1988_s20, 8  }
 0x3c8   : >> { %v2108_v43 = vrot.slane %v2912_v37, 1  ;;  %v2222_v44 = vshll.u32 %v2921_v39, 16  ;;  %v2220_v51 = vshrl.u32 %v2921_v39, 16  ;;  %v2936_v57 = vld [vmem:[%s3821_s8 + $0x10] sm:$0xe] }
 0x3c9   : >> { %v2007_v30 = vrot.slane %v2005_v25, 1  ;;  %v2279_v45 = vrot.slane %v2925_v40, 1  ;;  %v2393_v48 = vshll.u32 %v2934_v41, 16  ;;  %v2391_v53 = vshrl.u32 %v2934_v41, 16 }
 0x3ca   : >> { %v2224_v52 = vrot.slane %v2222_v44, 1  ;;  %v2938_v63 = vcombine.low %v2936_v57, %v2932_v34 }
 0x3cb   : >> { %v2008_v35 = vor.u32 %v2007_v30, %v2003_v24  ;;  %v2395_v54 = vrot.slane %v2393_v48, 1 }
 0x3cc   : >> { %v2225_v0 = vor.u32 %v2224_v52, %v2220_v51  ;;  %v2450_v1 = vrot.slane %v2938_v63, 1 }
 0x3cd   : >> { %3180 = vmatmul.mubr.msk.bf16.vlgmr.msra.gmra.mxu0 %vm333_vm3, %v2008_v35  ;;  %3198 = vmatmul.mubr.msk.bf16.vlgmr.msra.gmra.mxu1 %vm333_vm3, %v2915_v28  ;;  %v2396_v58 = vor.u32 %v2395_v54, %v2391_v53 }
 0x3ce   : >> { %3190 = vmatpush3.bf16.msra.mxu0 %v2113_v36  ;;  %3191 = vmatprep.mubr.msk.bf16.mxu0 %vm3366_vm4, %v3365_v49 }
 0x3cf   : >> { %3201 = vmatprep.subr.bf16.mxu0 %v3365_v49  ;;  %3208 = vmatpush3.bf16.msra.mxu1 %v2284_v38 }
 0x3d0   : >> { %3209 = vmatprep.mubr.msk.bf16.mxu1 %vm3366_vm4, %v3365_v49  ;;  %3219 = vmatprep.subr.bf16.mxu1 %v3365_v49 }
 0x3d5   : >> { %3192 = vmatmul.mubr.msk.bf16.vlgmr.msra.gmra.mxu0 %vm333_vm3, %v2108_v43  ;;  %3210 = vmatmul.mubr.msk.bf16.vlgmr.msra.gmra.mxu1 %vm333_vm3, %v2279_v45 }
 0x3d6   : >> { %3202 = vmatpush3.bf16.msra.mxu0 %v2230_v55  ;;  %3203 = vmatprep.mubr.msk.bf16.mxu0 %vm3366_vm4, %v3365_v49 }
 0x3d7   : >> { %3213 = vmatprep.subr.bf16.mxu0 %v3365_v49  ;;  %3220 = vmatpush3.bf16.msra.mxu1 %v2401_v50 }
 0x3d8   : >> { %3221 = vmatprep.mubr.msk.bf16.mxu1 %vm3366_vm4, %v3365_v49 }
 0x3dd   : >> { %3204 = vmatmul.mubr.msk.bf16.vlgmr.msra.gmra.mxu0 %vm333_vm3, %v2225_v0  ;;  %3222 = vmatmul.mubr.msk.bf16.vlgmr.msra.gmra.mxu1 %vm333_vm3, %v2396_v58 }
 0x3de   : >> { %3214 = vmatpush3.bf16.msra.mxu0 %v2338_v59  ;;  %3215 = vmatprep.mubr.msk.bf16.mxu0 %vm3366_vm4, %v3365_v49 }
 0x3df   : >> { %3225 = vmatprep.subr.bf16.mxu0 %v3365_v49 }
 0x3e5   : >> { %3216 = vmatmul.mubr.msk.bf16.vlgmr.msra.gmra.mxu0 %vm333_vm3, %v2928_v61 }
 0x3e6   : >> { %3226 = vmatpush3.bf16.msra.mxu0 %v2455_v62  ;;  %3227 = vmatprep.mubr.msk.bf16.mxu0 %vm3366_vm4, %v3365_v49 }
 0x3ed   : >> { %3228 = vmatmul.mubr.msk.bf16.vlgmr.msra.gmra.mxu0 %vm333_vm3, %v2450_v1 }
 0x485   : >> { %v2096_v2 = vpop.f32.mrf.mxu1 }
 0x487   : >> { %v3187_v3 = vpop.f32.mrf.mxu1 }
 0x489   : >> { %v2099_v5 = vpop.f32.mrf.mxu1 }
 0x48b   : >> { %v3188_v6 = vpop.f32.mrf.mxu1 }
 0x48d   : >> { %v2050_v7 = vpop.f32.mrf.mxu0  ;;  %v2203_v8 = vpop.f32.mrf.mxu1 }
 0x48e   : >> { %v2097_v20 = vadd.f32 %v2096_v2, %v2050_v7 }
 0x48f   : >> { %v3181_v9 = vpop.f32.mrf.mxu0  ;;  %v3199_v10 = vpop.f32.mrf.mxu1 }
 0x491   : >> { %v2053_v11 = vpop.f32.mrf.mxu0  ;;  %v2206_v12 = vpop.f32.mrf.mxu1 }
 0x493   : >> { %v3182_v13 = vpop.f32.mrf.mxu0  ;;  %v3200_v14 = vpop.f32.mrf.mxu1 }
 0x495   : >> { %v2149_v16 = vpop.f32.mrf.mxu0  ;;  %v2320_v47 = vpop.f32.mrf.mxu1 }
 0x496   : >> { %v2155_v23 = vadd.f32 %v2149_v16, %v2097_v20 }
 0x497   : >> { %v3193_v17 = vpop.f32.mrf.mxu0  ;;  %v3211_v18 = vpop.f32.mrf.mxu1 }
 0x498   : >> { %v2209_v28 = vadd.f32 %v2203_v8, %v2155_v23 }
 0x499   : >> { %v2152_v49 = vpop.f32.mrf.mxu0  ;;  %v2323_v19 = vpop.f32.mrf.mxu1 }
 0x49b   : >> { %v3194_v21 = vpop.f32.mrf.mxu0  ;;  %v3212_v22 = vpop.f32.mrf.mxu1 }
 0x49d   : >> { %v2266_v24 = vpop.f32.mrf.mxu0  ;;  %v2437_v25 = vpop.f32.mrf.mxu1 }
 0x49e   : >> { %v2272_v31 = vadd.f32 %v2266_v24, %v2209_v28 }
 0x49f   : >> { %v3205_v26 = vpop.f32.mrf.mxu0  ;;  %v3223_v27 = vpop.f32.mrf.mxu1 }
 0x4a0   : >> { %v2326_v34 = vadd.f32 %v2320_v47, %v2272_v31 }
 0x4a1   : >> { %v2269_v29 = vpop.f32.mrf.mxu0  ;;  %v2440_v30 = vpop.f32.mrf.mxu1 }
 0x4a3   : >> { %v3206_v32 = vpop.f32.mrf.mxu0  ;;  %v3224_v33 = vpop.f32.mrf.mxu1 }
 0x4a5   : >> { %v2374_v4 = vpop.f32.mrf.mxu0 }
 0x4a6   : >> { %v2380_v36 = vadd.f32 %v2374_v4, %v2326_v34 }
 0x4a7   : >> { %v3217_v35 = vpop.f32.mrf.mxu0 }
 0x4a8   : >> { %v2443_v39 = vadd.f32 %v2437_v25, %v2380_v36 }
 0x4a9   : >> { %v2377_v37 = vpop.f32.mrf.mxu0 }
 0x4ab   : >> { %v3218_v38 = vpop.f32.mrf.mxu0 }
 0x4ad   : >> { %v2491_v40 = vpop.f32.mrf.mxu0 }
 0x4ae   : >> { %v2497_v41 = vadd.f32 %v2491_v40, %v2443_v39 }
 0x4af   : >> { %v3229_v42 = vpop.f32.mrf.mxu0 }
 0x4b0   : >> { %v2502_v43 = vadd.f32 %v3792_v15, %v2497_v41 }
 0x4b1   : >> { %v2494_v44 = vpop.f32.mrf.mxu0 }
 0x4b2   : >> { %v2941_v45 = vmul.f32 -1.442695, %v2502_v43 }
 0x4b3   : >> { %v3230_v46 = vpop.f32.mrf.mxu0 }
 0x4b4   : >> { %3312 = vpow2.f32 %v2941_v45 }
 0x4c1   : >> { %v3313_v48 = vpop.eup %3312 }
 0x4c2   : >> { %v2506_v55 = vadd.f32 1.0, %v3313_v48 }
 0x4c4   : >> { %3314 = vrcp.f32 %v2506_v55 }
 0x4d1   : >> { %v3315_v50 = vpop.eup %3314 }
 0x4d2   : >> { %2510 = vrot.lane.b32.xlu0 %v3315_v50, %s3367_s12 }
 0x543   : > { %1987 = sbr.rel (!%p1985_p7) target bundleno = 958 (0x3be), region = 188 }
 0x544   : >> { %v2511_v51 = vpop.permute.xlu0 %2510 }
 0x545   : >> { %v2513_v52 = vmul.f32 %v2511_v51, %v2502_v43 }
 0x547   : >> { %2516 = vst.msk [vmem:[%s2515_s22] sm:$0xff] %vm333_vm3, %v2513_v52 }
 0x54e   : > { %v2517_v53 = vld [vmem:[%s3469_s30] sm:$0xff]  ;;  %v2518_v54 = vld [vmem:[%s3469_s30 + $0x8] sm:$0xff]  ;;  %v2519_v56 = vld [vmem:[%s3469_s30 + $0x10] sm:$0xff] }
 0x54f   : > { %v2520_v0 = vld [vmem:[%s3469_s30 + $0x18] sm:$0xff]  ;;  %v2525_v58 = vsel %vm333_vm3, %v2517_v53, 0.0  ;;  %v2526_v59 = vsel %vm333_vm3, %v2518_v54, 0.0  ;;  %v2528_v60 = vsel %vm333_vm3, %v2519_v56, 0.0  ;;  %v2521_v61 = vld [vmem:[%s3469_s30 + $0x20] sm:$0xff]  ;;  %v2522_v62 = vld [vmem:[%s3469_s30 + $0x28] sm:$0xff] }
 0x550   : > { %v2527_v57 = vadd.f32 %v2526_v59, %v2525_v58  ;;  %v2530_v15 = vsel %vm333_vm3, %v2520_v0, 0.0  ;;  %v2532_v1 = vsel %vm333_vm3, %v2521_v61, 0.0  ;;  %v2523_v2 = vld [vmem:[%s3469_s30 + $0x30] sm:$0xff]  ;;  %v2534_v5 = vsel %vm333_vm3, %v2522_v62, 0.0  ;;  %v2524_v6 = vld [vmem:[%s3469_s30 + $0x38] sm:$0xff] }
 0x551   : > { %v2536_v8 = vsel %vm333_vm3, %v2523_v2, 0.0  ;;  %v2538_v10 = vsel %vm333_vm3, %v2524_v6, 0.0 }
 0x552   : > { %v2529_v63 = vadd.f32 %v2528_v60, %v2527_v57 }
 0x554   : > { %v2531_v3 = vadd.f32 %v2530_v15, %v2529_v63 }
 0x556   : > { %v2533_v7 = vadd.f32 %v2532_v1, %v2531_v3 }
 0x558   : > { %v2535_v9 = vadd.f32 %v2534_v5, %v2533_v7 }
 0x55a   : > { %v2537_v11 = vadd.f32 %v2536_v8, %v2535_v9 }
 0x55c   : > { %v2539_v12 = vadd.f32 %v2538_v10, %v2537_v11 }
 0x55e   : > { %v2540_v13 = vrot.slane %v2539_v12, 4 }
 0x560   : > { %v2541_v14 = vadd.f32 %v2540_v13, %v2539_v12 }
 0x562   : > { %v2542_v16 = vrot.slane %v2541_v14, 2 }
 0x564   : > { %v2543_v47 = vadd.f32 %v2542_v16, %v2541_v14 }
 0x566   : > { %v2544_v17 = vrot.slane %v2543_v47, 1 }
 0x568   : > { %v2545_v18 = vadd.f32 %v2544_v17, %v2543_v47 }
 0x56a   : > { %v2546_v49 = vmul.f32 0.015625, %v2545_v18 }
 0x56c   : > { %v2547_v19 = vsub.f32 %v2517_v53, %v2546_v49  ;;  %v2548_v20 = vsub.f32 %v2518_v54, %v2546_v49  ;;  %v2549_v21 = vsub.f32 %v2519_v56, %v2546_v49  ;;  %v2550_v22 = vsub.f32 %v2520_v0, %v2546_v49 }
 0x56d   : > { %v2551_v23 = vsub.f32 %v2521_v61, %v2546_v49  ;;  %v2552_v24 = vsub.f32 %v2522_v62, %v2546_v49  ;;  %v2553_v29 = vsub.f32 %v2523_v2, %v2546_v49  ;;  %v2554_v34 = vsub.f32 %v2524_v6, %v2546_v49 }
 0x56e   : > { %v2555_v25 = vmul.f32 %v2547_v19, %v2547_v19  ;;  %v2556_v26 = vmul.f32 %v2548_v20, %v2548_v20  ;;  %v2557_v27 = vmul.f32 %v2549_v21, %v2549_v21  ;;  %v2558_v28 = vmul.f32 %v2550_v22, %v2550_v22 }
 0x56f   : > { %v2559_v30 = vmul.f32 %v2551_v23, %v2551_v23  ;;  %v2560_v35 = vmul.f32 %v2552_v24, %v2552_v24  ;;  %v2561_v38 = vmul.f32 %v2553_v29, %v2553_v29  ;;  %v2562_v41 = vmul.f32 %v2554_v34, %v2554_v34 }
 0x570   : > { %v2563_v31 = vsel %vm333_vm3, %v2555_v25, 0.0  ;;  %v2564_v32 = vsel %vm333_vm3, %v2556_v26, 0.0  ;;  %v2566_v33 = vsel %vm333_vm3, %v2557_v27, 0.0  ;;  %v2568_v36 = vsel %vm333_vm3, %v2558_v28, 0.0 }
 0x571   : > { %v2565_v4 = vadd.f32 %v2564_v32, %v2563_v31  ;;  %v2570_v39 = vsel %vm333_vm3, %v2559_v30, 0.0  ;;  %v2572_v42 = vsel %vm333_vm3, %v2560_v35, 0.0  ;;  %v2574_v44 = vsel %vm333_vm3, %v2561_v38, 0.0 }
 0x572   : > { %v2576_v46 = vsel %vm333_vm3, %v2562_v41, 0.0 }
 0x573   : > { %v2567_v37 = vadd.f32 %v2566_v33, %v2565_v4 }
 0x575   : > { %v2569_v40 = vadd.f32 %v2568_v36, %v2567_v37 }
 0x577   : > { %v2571_v43 = vadd.f32 %v2570_v39, %v2569_v40 }
 0x579   : > { %v2573_v45 = vadd.f32 %v2572_v42, %v2571_v43 }
 0x57b   : > { %v2575_v48 = vadd.f32 %v2574_v44, %v2573_v45 }
 0x57d   : > { %v2577_v55 = vadd.f32 %v2576_v46, %v2575_v48 }
 0x57f   : > { %v2578_v50 = vrot.slane %v2577_v55, 4 }
 0x581   : > { %v2579_v51 = vadd.f32 %v2578_v50, %v2577_v55 }
 0x583   : > { %v2580_v52 = vrot.slane %v2579_v51, 2 }
 0x585   : > { %v2581_v53 = vadd.f32 %v2580_v52, %v2579_v51 }
 0x587   : > { %v2582_v54 = vrot.slane %v2581_v53, 1 }
 0x589   : > { %v2583_v56 = vadd.f32 %v2582_v54, %v2581_v53 }
 0x58b   : > { %v2584_v0 = vmul.f32 0.015625, %v2583_v56 }
 0x58d   : > { %v2585_v58 = vadd.f32 1e-05, %v2584_v0 }
 0x58f   : > { %3316 = vrsqrt.f32 %v2585_v58 }
 0x59c   : > { %v3317_v59 = vpop.eup %3316 }
 0x59d   : > { %v2587_v60 = vmul.f32 %v3317_v59, %v2547_v19  ;;  %v2588_v61 = vmul.f32 %v3317_v59, %v2548_v20  ;;  %v2589_v57 = vmul.f32 %v3317_v59, %v2549_v21  ;;  %v2590_v15 = vmul.f32 %v3317_v59, %v2550_v22 }
 0x59e   : > { %v2591_v62 = vmul.f32 %v3317_v59, %v2551_v23  ;;  %v2592_v63 = vmul.f32 %v3317_v59, %v2552_v24  ;;  %v2593_v1 = vmul.f32 %v3317_v59, %v2553_v29  ;;  %v2594_v2 = vmul.f32 %v3317_v59, %v2554_v34 }
 0x59f   : > { %vm2595_vm2 = vcmp.ge.f32.partialorder %v2587_v60, 0.0  ;;  %v2603_v3 = vmul.f32 0.1, %v2587_v60  ;;  %vm2596_vm5 = vcmp.ge.f32.partialorder %v2588_v61, 0.0  ;;  %v2604_v5 = vmul.f32 0.1, %v2588_v61 }
 0x5a0   : > { %vm2597_vm6 = vcmp.ge.f32.partialorder %v2589_v57, 0.0  ;;  %v2605_v6 = vmul.f32 0.1, %v2589_v57  ;;  %vm2598_vm7 = vcmp.ge.f32.partialorder %v2590_v15, 0.0  ;;  %v2606_v7 = vmul.f32 0.1, %v2590_v15 }
 0x5a1   : > { %v2611_v8 = vsel %vm2595_vm2, %v2587_v60, %v2603_v3  ;;  %v2612_v9 = vsel %vm2596_vm5, %v2588_v61, %v2604_v5  ;;  %vm2599_vm8 = vcmp.ge.f32.partialorder %v2591_v62, 0.0  ;;  %v2607_v10 = vmul.f32 0.1, %v2591_v62 }
 0x5a2   : > { %2619 = vst.msk [vmem:[%s3469_s30] sm:$0xff] %vm333_vm3, %v2611_v8  ;;  %2620 = vst.msk [vmem:[%s3469_s30 + $0x8] sm:$0xff] %vm333_vm3, %v2612_v9  ;;  %v2613_v11 = vsel %vm2597_vm6, %v2589_v57, %v2605_v6  ;;  %v2614_v12 = vsel %vm2598_vm7, %v2590_v15, %v2606_v7  ;;  %vm2600_vm9 = vcmp.ge.f32.partialorder %v2592_v63, 0.0  ;;  %v2608_v13 = vmul.f32 0.1, %v2592_v63 }
 0x5a3   : > { %2621 = vst.msk [vmem:[%s3469_s30 + $0x10] sm:$0xff] %vm333_vm3, %v2613_v11  ;;  %2622 = vst.msk [vmem:[%s3469_s30 + $0x18] sm:$0xff] %vm333_vm3, %v2614_v12  ;;  %v2615_v14 = vsel %vm2599_vm8, %v2591_v62, %v2607_v10  ;;  %vm2601_vm10 = vcmp.ge.f32.partialorder %v2593_v1, 0.0  ;;  %v2609_v16 = vmul.f32 0.1, %v2593_v1  ;;  %vm2602_vm11 = vcmp.ge.f32.partialorder %v2594_v2, 0.0 }
 0x5a4   : > { %2623 = vst.msk [vmem:[%s3469_s30 + $0x20] sm:$0xff] %vm333_vm3, %v2615_v14  ;;  %v2616_v47 = vsel %vm2600_vm9, %v2592_v63, %v2608_v13  ;;  %v2610_v17 = vmul.f32 0.1, %v2594_v2 }
 0x5a5   : > { %2624 = vst.msk [vmem:[%s3469_s30 + $0x28] sm:$0xff] %vm333_vm3, %v2616_v47  ;;  %v2617_v18 = vsel %vm2601_vm10, %v2593_v1, %v2609_v16 }
 0x5a6   : > { %2625 = vst.msk [vmem:[%s3469_s30 + $0x30] sm:$0xff] %vm333_vm3, %v2617_v18  ;;  %v2618_v49 = vsel %vm2602_vm11, %v2594_v2, %v2610_v17 }
 0x5a7   : > { %2626 = vst.msk [vmem:[%s3469_s30 + $0x38] sm:$0xff] %vm333_vm3, %v2618_v49 }
 0x5a8 PF: > { %s16_s21 = sadd.s32 1, %s3340_s21  }
 0x5a9   : > { %p13_p8 = scmp.ge.s32.totalorder %s16_s21, 4  }
 0x5ab   :  { %15 = sbr.rel (!%p13_p8) target bundleno = 1 (0x1), region = 199 }

</bundles_post_ra>
